<compile_context>
chip_gen: v5e
topology: v5e:2x2
jax: 0.10.0
libtpu: 0.0.40
codegen_flags: <defaults>
</compile_context>

<pallas_src>
import numpy as np
import jax
import jax.numpy as jnp
from jax import lax
from jax.experimental import pallas as pl
from jax.experimental.pallas import tpu as pltpu

# ---- static problem sizes (the forward's view(-1, 22, 40) forces the conv1
#      output to have exactly 40 spatial positions: (H-9)*(W-7) == 40) ----
B = 2
C_IN, H_IN, W_IN = 4, 14, 15
KH, KW = 10, 8
OH, OW = H_IN - KH + 1, W_IN - KW + 1      # 5, 8
T = OH * OW                                 # 40
C1 = 22
K1 = C_IN * KH * KW                         # 320
FC_IN, FC_OUT = C1 * T, 180                 # 880, 180

# packed conv-weight slab row offsets (all starts 8-sublane aligned)
_W1_OFF = 0
_W2_OFF = K1                 # 320
_W3_OFF = K1 + 72            # 392 (w2 block padded 66 -> 72 rows for alignment)
_WPACK_ROWS = K1 + 144       # 464


# ----------------------------- Pallas kernel -------------------------------
def _classifier_kernel(xcols_ref, wpack_ref, bias_ref, w4_ref, b4_ref, out_ref):
    """conv1 (im2col matmul) + 2x Conv1d (taps fused) + fc4, all on the MXU."""
    f32 = jnp.float32
    bf16 = jnp.bfloat16

    b1 = bias_ref[0:1, :]
    b2 = bias_ref[1:2, :]
    b3 = bias_ref[2:3, :]

    # batch-boundary masks: row r of the slab holds (batch r // T, time r % T)
    row = lax.broadcasted_iota(jnp.int32, (B * T, C1), 0)
    first = row == 0                    # time step 0 of each batch element
    last = row == (T - 1)               # time step T-1 of each batch element
    for b in range(1, B):
        first = jnp.logical_or(first, row == b * T)
        last = jnp.logical_or(last, row == (b + 1) * T - 1)

    # conv1: (B*T, 320) @ (320, 22) + bias, relu   (bf16 MXU, f32 accumulate)
    h = jnp.dot(xcols_ref[...], wpack_ref[_W1_OFF:_W1_OFF + K1, :],
                preferred_element_type=f32)
    h = jnp.maximum(h + b1, 0.0)

    def conv1d_relu(h, w_cat, bias):
        # h[t-1] / h[t+1] via circular roll on the sublane (row) axis, with
        # rows that would cross a batch boundary zeroed out.
        hp = jnp.where(first, 0.0, pltpu.roll(h, shift=1, axis=0))
        hn = jnp.where(last, 0.0, pltpu.roll(h, shift=B * T - 1, axis=0))
        lhs = jnp.concatenate([hp, h, hn], axis=1).astype(bf16)   # (B*T, 66)
        z = jnp.dot(lhs, w_cat, preferred_element_type=f32) + bias
        return jnp.maximum(z, 0.0)

    h = conv1d_relu(h, wpack_ref[_W2_OFF:_W2_OFF + 3 * C1, :], b2)
    h = conv1d_relu(h, wpack_ref[_W3_OFF:_W3_OFF + 3 * C1, :], b3)

    # fc4: flatten each batch element's (T, C1) block into one 880-wide row
    # (static sublane slices + lane concat, stays in vregs), then one MXU
    # matmul against the (t, c)-permuted weight.
    rows = []
    for b in range(B):
        pieces = [h[b * T + t: b * T + t + 1, :] for t in range(T)]  # (1, 22) each
        rows.append(jnp.concatenate(pieces, axis=1))                 # (1, 880)
    v = jnp.concatenate(rows, axis=0).astype(bf16)                   # (B, 880)

    y = jnp.dot(v, w4_ref[...], preferred_element_type=f32) + b4_ref[...]
    out_ref[...] = y


# ------------------------------- glue (JAX) --------------------------------
def _im2col_nchw(x):
    # x: (B, C, H, W) -> (B*T, C*KH*KW); column order (ic, kh, kw) matches
    # PyTorch's Conv2d weight flatten order; row order is (b, oh, ow).
    patches = []
    for kh in range(KH):
        for kw in range(KW):
            patches.append(x[:, :, kh:kh + OH, kw:kw + OW])       # (B, C, OH, OW)
    p = jnp.stack(patches, axis=2)                                # (B, C, KH*KW, OH, OW)
    p = p.reshape(B, K1, T)
    return p.transpose(0, 2, 1).reshape(B * T, K1)                # (B*T, 320)


def _pack_conv_weights(w1, w2, w3):
    # One bf16 slab: rows [0:320) conv1, [320:386) conv2 taps, [392:458) conv3
    # taps (zero rows keep every slice start 8-sublane aligned).
    w1m = w1.reshape(C1, K1).T                                    # (320, 22)

    def cat_taps(w):                                              # (OC, IC, 3) -> (66, 22)
        return jnp.transpose(w, (2, 1, 0)).reshape(3 * C1, C1)

    pad6 = jnp.zeros((_W3_OFF - _W2_OFF - 3 * C1, C1), jnp.float32)
    wpack = jnp.concatenate(
        [w1m, cat_taps(w2), pad6, cat_taps(w3), pad6], axis=0)
    assert wpack.shape == (_WPACK_ROWS, C1)
    return wpack.astype(jnp.bfloat16)


def _permute_fc_weight(w4):
    # The kernel flattens h3 in (t, c) order (channels on lanes, time on
    # sublanes), so permute w4's input dim to match:
    #   w4p[t*C1 + c, o] = w4[o, c*T + t]
    return jnp.transpose(w4.reshape(FC_OUT, C1, T), (2, 1, 0)).reshape(FC_IN, FC_OUT)


def classifier_forward(x, params):
    w1, b1, w2, b2, w3, b3, w4, b4 = params
    bf16 = jnp.bfloat16

    xcols = _im2col_nchw(x).astype(bf16)                 # (80, 320)  bf16
    wpack = _pack_conv_weights(w1, w2, w3)               # (464, 22)  bf16
    bpack = jnp.stack([b1, b2, b3], axis=0)              # (3, 22)    f32
    w4p = _permute_fc_weight(w4).astype(bf16)            # (880, 180) bf16

    vmem = pl.BlockSpec(memory_space=pltpu.MemorySpace.VMEM)

    y = pl.pallas_call(
        _classifier_kernel,
        out_shape=jax.ShapeDtypeStruct((B, FC_OUT), jnp.float32),
        in_specs=[vmem, vmem, vmem, vmem, vmem],
        out_specs=vmem,
    )(xcols, wpack, bpack, w4p, b4.reshape(1, FC_OUT))

    return y.reshape(B, 36, 5)


# --------------------------- pure-JAX reference ----------------------------
def reference_forward(x, params):
    w1, b1, w2, b2, w3, b3, w4, b4 = params
    hp = lax.Precision.HIGHEST
    y = lax.conv_general_dilated(x, w1, (1, 1), 'VALID',
                                 dimension_numbers=('NCHW', 'OIHW', 'NCHW'),
                                 precision=hp)
    y = jnp.maximum(y + b1[None, :, None, None], 0.0)
    y = y.reshape(-1, C1, T)
    y = lax.conv_general_dilated(y, w2, (1,), [(1, 1)],
                                 dimension_numbers=('NCH', 'OIH', 'NCH'),
                                 precision=hp)
    y = jnp.maximum(y + b2[None, :, None], 0.0)
    y = lax.conv_general_dilated(y, w3, (1,), [(1, 1)],
                                 dimension_numbers=('NCH', 'OIH', 'NCH'),
                                 precision=hp)
    y = jnp.maximum(y + b3[None, :, None], 0.0)
    y = y.reshape(-1, FC_IN)
    y = jnp.dot(y, w4.T, precision=hp) + b4
    return y.reshape(-1, 36, 5)


# ------------------------------ param init ---------------------------------
def init_params(key):
    ks = jax.random.split(key, 8)

    def u(k, shape, fan_in):
        bound = 1.0 / np.sqrt(fan_in)
        return jax.random.uniform(k, shape, jnp.float32, -bound, bound)

    w1 = u(ks[0], (C1, C_IN, KH, KW), C_IN * KH * KW)
    b1 = u(ks[1], (C1,), C_IN * KH * KW)
    w2 = u(ks[2], (C1, C1, 3), C1 * 3)
    b2 = u(ks[3], (C1,), C1 * 3)
    w3 = u(ks[4], (C1, C1, 3), C1 * 3)
    b3 = u(ks[5], (C1,), C1 * 3)
    w4 = u(ks[6], (FC_OUT, FC_IN), FC_IN)
    b4 = u(ks[7], (FC_OUT,), FC_IN)
    return (w1, b1, w2, b2, w3, b3, w4, b4)


if __name__ == "__main__":
    key = jax.random.PRNGKey(0)
    pkey, xkey = jax.random.split(key)
    params = init_params(pkey)
    x = jax.random.normal(xkey, (B, C_IN, H_IN, W_IN), jnp.float32)

    out = jax.jit(classifier_forward)(x, params)
    out = jax.block_until_ready(out)

    ref = reference_forward(x, params)
    assert out.shape == (B, 36, 5), out.shape
    if not np.allclose(np.asarray(out), np.asarray(ref), rtol=2e-2, atol=2e-2):
        err = float(jnp.max(jnp.abs(out - ref)))
        raise SystemExit(f"mismatch vs reference: max abs err {err}")
    print("KERNEL_OK")
</pallas_src>

<mosaic_0001>
module attributes {stable_mosaic.version = 11 : i64} {
  func.func @_classifier_kernel(%arg0: memref<80x320xbf16, #tpu.memory_space<vmem>>, %arg1: memref<464x22xbf16, #tpu.memory_space<vmem>>, %arg2: memref<3x22xf32, #tpu.memory_space<vmem>>, %arg3: memref<880x180xbf16, #tpu.memory_space<vmem>>, %arg4: memref<1x180xf32, #tpu.memory_space<vmem>>, %arg5: memref<2x180xf32, #tpu.memory_space<vmem>>) attributes {dimension_semantics = [], scalar_prefetch = 0 : i64, scratch_operands = 0 : i64, tpu.core_type = #tpu.core_type<tc>} {
    %c0 = arith.constant 0 : index
    %c0_0 = arith.constant 0 : index
    %0 = vector.load %arg2[%c0, %c0_0] : memref<3x22xf32, #tpu.memory_space<vmem>>, vector<1x22xf32>
    %c1 = arith.constant 1 : index
    %c0_1 = arith.constant 0 : index
    %1 = vector.load %arg2[%c1, %c0_1] : memref<3x22xf32, #tpu.memory_space<vmem>>, vector<1x22xf32>
    %c2 = arith.constant 2 : index
    %c0_2 = arith.constant 0 : index
    %2 = vector.load %arg2[%c2, %c0_2] : memref<3x22xf32, #tpu.memory_space<vmem>>, vector<1x22xf32>
    %3 = tpu.iota {dimensions = array<i32: 0>} : vector<80x22xi32>
    %c0_i32 = arith.constant 0 : i32
    %4 = vector.broadcast %c0_i32 : i32 to vector<80x22xi32>
    %5 = arith.cmpi eq, %3, %4 : vector<80x22xi32>
    %c39_i32 = arith.constant 39 : i32
    %6 = vector.broadcast %c39_i32 : i32 to vector<80x22xi32>
    %7 = arith.cmpi eq, %3, %6 : vector<80x22xi32>
    %c40_i32 = arith.constant 40 : i32
    %8 = vector.broadcast %c40_i32 : i32 to vector<80x22xi32>
    %9 = arith.cmpi eq, %3, %8 : vector<80x22xi32>
    %10 = arith.ori %5, %9 : vector<80x22xi1>
    %c79_i32 = arith.constant 79 : i32
    %11 = vector.broadcast %c79_i32 : i32 to vector<80x22xi32>
    %12 = arith.cmpi eq, %3, %11 : vector<80x22xi32>
    %13 = arith.ori %7, %12 : vector<80x22xi1>
    %c0_3 = arith.constant 0 : index
    %c0_4 = arith.constant 0 : index
    %14 = vector.load %arg0[%c0_3, %c0_4] : memref<80x320xbf16, #tpu.memory_space<vmem>>, vector<80x320xbf16>
    %c0_5 = arith.constant 0 : index
    %c0_6 = arith.constant 0 : index
    %15 = vector.load %arg1[%c0_5, %c0_6] : memref<464x22xbf16, #tpu.memory_space<vmem>>, vector<320x22xbf16>
    %cst = arith.constant dense<0.000000e+00> : vector<80x22xf32>
    %16 = tpu.matmul %14, %15, %cst {dimension_numbers = #tpu.dot_dimension_numbers<[1], [0], [0], [1], [0, 0, 1, 1], [], []>} : vector<80x320xbf16>, vector<320x22xbf16>, vector<80x22xf32> -> vector<80x22xf32>
    %17 = vector.broadcast %0 : vector<1x22xf32> to vector<80x22xf32>
    %18 = arith.addf %16, %17 : vector<80x22xf32>
    %cst_7 = arith.constant 0.000000e+00 : f32
    %19 = vector.broadcast %cst_7 : f32 to vector<80x22xf32>
    %20 = arith.maximumf %18, %19 : vector<80x22xf32>
    %c320 = arith.constant 320 : index
    %c0_8 = arith.constant 0 : index
    %21 = vector.load %arg1[%c320, %c0_8] : memref<464x22xbf16, #tpu.memory_space<vmem>>, vector<66x22xbf16>
    %c1_i32 = arith.constant 1 : i32
    %22 = tpu.dynamic_rotate %20 by %c1_i32 dim 0 : vector<80x22xf32>, i32 -> vector<80x22xf32>
    %cst_9 = arith.constant 0.000000e+00 : f32
    %23 = vector.broadcast %cst_9 : f32 to vector<80x22xf32>
    %24 = arith.select %10, %23, %22 : vector<80x22xi1>, vector<80x22xf32>
    %c79_i32_10 = arith.constant 79 : i32
    %25 = tpu.dynamic_rotate %20 by %c79_i32_10 dim 0 : vector<80x22xf32>, i32 -> vector<80x22xf32>
    %cst_11 = arith.constant 0.000000e+00 : f32
    %26 = vector.broadcast %cst_11 : f32 to vector<80x22xf32>
    %27 = arith.select %13, %26, %25 : vector<80x22xi1>, vector<80x22xf32>
    %28 = tpu.concatenate %24, %20, %27 in 1 : vector<80x22xf32>, vector<80x22xf32>, vector<80x22xf32> -> vector<80x66xf32>
    %29 = arith.truncf %28 : vector<80x66xf32> to vector<80x66xbf16>
    %cst_12 = arith.constant dense<0.000000e+00> : vector<80x22xf32>
    %30 = tpu.matmul %29, %21, %cst_12 {dimension_numbers = #tpu.dot_dimension_numbers<[1], [0], [0], [1], [0, 0, 1, 1], [], []>} : vector<80x66xbf16>, vector<66x22xbf16>, vector<80x22xf32> -> vector<80x22xf32>
    %31 = vector.broadcast %1 : vector<1x22xf32> to vector<80x22xf32>
    %32 = arith.addf %30, %31 : vector<80x22xf32>
    %cst_13 = arith.constant 0.000000e+00 : f32
    %33 = vector.broadcast %cst_13 : f32 to vector<80x22xf32>
    %34 = arith.maximumf %32, %33 : vector<80x22xf32>
    %c392 = arith.constant 392 : index
    %c0_14 = arith.constant 0 : index
    %35 = vector.load %arg1[%c392, %c0_14] : memref<464x22xbf16, #tpu.memory_space<vmem>>, vector<66x22xbf16>
    %c1_i32_15 = arith.constant 1 : i32
    %36 = tpu.dynamic_rotate %34 by %c1_i32_15 dim 0 : vector<80x22xf32>, i32 -> vector<80x22xf32>
    %cst_16 = arith.constant 0.000000e+00 : f32
    %37 = vector.broadcast %cst_16 : f32 to vector<80x22xf32>
    %38 = arith.select %10, %37, %36 : vector<80x22xi1>, vector<80x22xf32>
    %c79_i32_17 = arith.constant 79 : i32
    %39 = tpu.dynamic_rotate %34 by %c79_i32_17 dim 0 : vector<80x22xf32>, i32 -> vector<80x22xf32>
    %cst_18 = arith.constant 0.000000e+00 : f32
    %40 = vector.broadcast %cst_18 : f32 to vector<80x22xf32>
    %41 = arith.select %13, %40, %39 : vector<80x22xi1>, vector<80x22xf32>
    %42 = tpu.concatenate %38, %34, %41 in 1 : vector<80x22xf32>, vector<80x22xf32>, vector<80x22xf32> -> vector<80x66xf32>
    %43 = arith.truncf %42 : vector<80x66xf32> to vector<80x66xbf16>
    %cst_19 = arith.constant dense<0.000000e+00> : vector<80x22xf32>
    %44 = tpu.matmul %43, %35, %cst_19 {dimension_numbers = #tpu.dot_dimension_numbers<[1], [0], [0], [1], [0, 0, 1, 1], [], []>} : vector<80x66xbf16>, vector<66x22xbf16>, vector<80x22xf32> -> vector<80x22xf32>
    %45 = vector.broadcast %2 : vector<1x22xf32> to vector<80x22xf32>
    %46 = arith.addf %44, %45 : vector<80x22xf32>
    %cst_20 = arith.constant 0.000000e+00 : f32
    %47 = vector.broadcast %cst_20 : f32 to vector<80x22xf32>
    %48 = arith.maximumf %46, %47 : vector<80x22xf32>
    %49 = vector.extract_strided_slice %48 {offsets = [0, 0], sizes = [1, 22], strides = [1, 1]} : vector<80x22xf32> to vector<1x22xf32>
    %50 = vector.extract_strided_slice %48 {offsets = [1, 0], sizes = [1, 22], strides = [1, 1]} : vector<80x22xf32> to vector<1x22xf32>
    %51 = vector.extract_strided_slice %48 {offsets = [2, 0], sizes = [1, 22], strides = [1, 1]} : vector<80x22xf32> to vector<1x22xf32>
    %52 = vector.extract_strided_slice %48 {offsets = [3, 0], sizes = [1, 22], strides = [1, 1]} : vector<80x22xf32> to vector<1x22xf32>
    %53 = vector.extract_strided_slice %48 {offsets = [4, 0], sizes = [1, 22], strides = [1, 1]} : vector<80x22xf32> to vector<1x22xf32>
    %54 = vector.extract_strided_slice %48 {offsets = [5, 0], sizes = [1, 22], strides = [1, 1]} : vector<80x22xf32> to vector<1x22xf32>
    %55 = vector.extract_strided_slice %48 {offsets = [6, 0], sizes = [1, 22], strides = [1, 1]} : vector<80x22xf32> to vector<1x22xf32>
    %56 = vector.extract_strided_slice %48 {offsets = [7, 0], sizes = [1, 22], strides = [1, 1]} : vector<80x22xf32> to vector<1x22xf32>
    %57 = vector.extract_strided_slice %48 {offsets = [8, 0], sizes = [1, 22], strides = [1, 1]} : vector<80x22xf32> to vector<1x22xf32>
    %58 = vector.extract_strided_slice %48 {offsets = [9, 0], sizes = [1, 22], strides = [1, 1]} : vector<80x22xf32> to vector<1x22xf32>
    %59 = vector.extract_strided_slice %48 {offsets = [10, 0], sizes = [1, 22], strides = [1, 1]} : vector<80x22xf32> to vector<1x22xf32>
    %60 = vector.extract_strided_slice %48 {offsets = [11, 0], sizes = [1, 22], strides = [1, 1]} : vector<80x22xf32> to vector<1x22xf32>
    %61 = vector.extract_strided_slice %48 {offsets = [12, 0], sizes = [1, 22], strides = [1, 1]} : vector<80x22xf32> to vector<1x22xf32>
    %62 = vector.extract_strided_slice %48 {offsets = [13, 0], sizes = [1, 22], strides = [1, 1]} : vector<80x22xf32> to vector<1x22xf32>
    %63 = vector.extract_strided_slice %48 {offsets = [14, 0], sizes = [1, 22], strides = [1, 1]} : vector<80x22xf32> to vector<1x22xf32>
    %64 = vector.extract_strided_slice %48 {offsets = [15, 0], sizes = [1, 22], strides = [1, 1]} : vector<80x22xf32> to vector<1x22xf32>
    %65 = vector.extract_strided_slice %48 {offsets = [16, 0], sizes = [1, 22], strides = [1, 1]} : vector<80x22xf32> to vector<1x22xf32>
    %66 = vector.extract_strided_slice %48 {offsets = [17, 0], sizes = [1, 22], strides = [1, 1]} : vector<80x22xf32> to vector<1x22xf32>
    %67 = vector.extract_strided_slice %48 {offsets = [18, 0], sizes = [1, 22], strides = [1, 1]} : vector<80x22xf32> to vector<1x22xf32>
    %68 = vector.extract_strided_slice %48 {offsets = [19, 0], sizes = [1, 22], strides = [1, 1]} : vector<80x22xf32> to vector<1x22xf32>
    %69 = vector.extract_strided_slice %48 {offsets = [20, 0], sizes = [1, 22], strides = [1, 1]} : vector<80x22xf32> to vector<1x22xf32>
    %70 = vector.extract_strided_slice %48 {offsets = [21, 0], sizes = [1, 22], strides = [1, 1]} : vector<80x22xf32> to vector<1x22xf32>
    %71 = vector.extract_strided_slice %48 {offsets = [22, 0], sizes = [1, 22], strides = [1, 1]} : vector<80x22xf32> to vector<1x22xf32>
    %72 = vector.extract_strided_slice %48 {offsets = [23, 0], sizes = [1, 22], strides = [1, 1]} : vector<80x22xf32> to vector<1x22xf32>
    %73 = vector.extract_strided_slice %48 {offsets = [24, 0], sizes = [1, 22], strides = [1, 1]} : vector<80x22xf32> to vector<1x22xf32>
    %74 = vector.extract_strided_slice %48 {offsets = [25, 0], sizes = [1, 22], strides = [1, 1]} : vector<80x22xf32> to vector<1x22xf32>
    %75 = vector.extract_strided_slice %48 {offsets = [26, 0], sizes = [1, 22], strides = [1, 1]} : vector<80x22xf32> to vector<1x22xf32>
    %76 = vector.extract_strided_slice %48 {offsets = [27, 0], sizes = [1, 22], strides = [1, 1]} : vector<80x22xf32> to vector<1x22xf32>
    %77 = vector.extract_strided_slice %48 {offsets = [28, 0], sizes = [1, 22], strides = [1, 1]} : vector<80x22xf32> to vector<1x22xf32>
    %78 = vector.extract_strided_slice %48 {offsets = [29, 0], sizes = [1, 22], strides = [1, 1]} : vector<80x22xf32> to vector<1x22xf32>
    %79 = vector.extract_strided_slice %48 {offsets = [30, 0], sizes = [1, 22], strides = [1, 1]} : vector<80x22xf32> to vector<1x22xf32>
    %80 = vector.extract_strided_slice %48 {offsets = [31, 0], sizes = [1, 22], strides = [1, 1]} : vector<80x22xf32> to vector<1x22xf32>
    %81 = vector.extract_strided_slice %48 {offsets = [32, 0], sizes = [1, 22], strides = [1, 1]} : vector<80x22xf32> to vector<1x22xf32>
    %82 = vector.extract_strided_slice %48 {offsets = [33, 0], sizes = [1, 22], strides = [1, 1]} : vector<80x22xf32> to vector<1x22xf32>
    %83 = vector.extract_strided_slice %48 {offsets = [34, 0], sizes = [1, 22], strides = [1, 1]} : vector<80x22xf32> to vector<1x22xf32>
    %84 = vector.extract_strided_slice %48 {offsets = [35, 0], sizes = [1, 22], strides = [1, 1]} : vector<80x22xf32> to vector<1x22xf32>
    %85 = vector.extract_strided_slice %48 {offsets = [36, 0], sizes = [1, 22], strides = [1, 1]} : vector<80x22xf32> to vector<1x22xf32>
    %86 = vector.extract_strided_slice %48 {offsets = [37, 0], sizes = [1, 22], strides = [1, 1]} : vector<80x22xf32> to vector<1x22xf32>
    %87 = vector.extract_strided_slice %48 {offsets = [38, 0], sizes = [1, 22], strides = [1, 1]} : vector<80x22xf32> to vector<1x22xf32>
    %88 = vector.extract_strided_slice %48 {offsets = [39, 0], sizes = [1, 22], strides = [1, 1]} : vector<80x22xf32> to vector<1x22xf32>
    %89 = tpu.concatenate %49, %50, %51, %52, %53, %54, %55, %56, %57, %58, %59, %60, %61, %62, %63, %64 in 1 : vector<1x22xf32>, vector<1x22xf32>, vector<1x22xf32>, vector<1x22xf32>, vector<1x22xf32>, vector<1x22xf32>, vector<1x22xf32>, vector<1x22xf32>, vector<1x22xf32>, vector<1x22xf32>, vector<1x22xf32>, vector<1x22xf32>, vector<1x22xf32>, vector<1x22xf32>, vector<1x22xf32>, vector<1x22xf32> -> vector<1x352xf32>
    %90 = tpu.concatenate %65, %66, %67, %68, %69, %70, %71, %72, %73, %74, %75, %76, %77, %78, %79, %80 in 1 : vector<1x22xf32>, vector<1x22xf32>, vector<1x22xf32>, vector<1x22xf32>, vector<1x22xf32>, vector<1x22xf32>, vector<1x22xf32>, vector<1x22xf32>, vector<1x22xf32>, vector<1x22xf32>, vector<1x22xf32>, vector<1x22xf32>, vector<1x22xf32>, vector<1x22xf32>, vector<1x22xf32>, vector<1x22xf32> -> vector<1x352xf32>
    %91 = tpu.concatenate %81, %82, %83, %84, %85, %86, %87, %88 in 1 : vector<1x22xf32>, vector<1x22xf32>, vector<1x22xf32>, vector<1x22xf32>, vector<1x22xf32>, vector<1x22xf32>, vector<1x22xf32>, vector<1x22xf32> -> vector<1x176xf32>
    %92 = tpu.concatenate %89, %90, %91 in 1 : vector<1x352xf32>, vector<1x352xf32>, vector<1x176xf32> -> vector<1x880xf32>
    %93 = vector.extract_strided_slice %48 {offsets = [40, 0], sizes = [1, 22], strides = [1, 1]} : vector<80x22xf32> to vector<1x22xf32>
    %94 = vector.extract_strided_slice %48 {offsets = [41, 0], sizes = [1, 22], strides = [1, 1]} : vector<80x22xf32> to vector<1x22xf32>
    %95 = vector.extract_strided_slice %48 {offsets = [42, 0], sizes = [1, 22], strides = [1, 1]} : vector<80x22xf32> to vector<1x22xf32>
    %96 = vector.extract_strided_slice %48 {offsets = [43, 0], sizes = [1, 22], strides = [1, 1]} : vector<80x22xf32> to vector<1x22xf32>
    %97 = vector.extract_strided_slice %48 {offsets = [44, 0], sizes = [1, 22], strides = [1, 1]} : vector<80x22xf32> to vector<1x22xf32>
    %98 = vector.extract_strided_slice %48 {offsets = [45, 0], sizes = [1, 22], strides = [1, 1]} : vector<80x22xf32> to vector<1x22xf32>
    %99 = vector.extract_strided_slice %48 {offsets = [46, 0], sizes = [1, 22], strides = [1, 1]} : vector<80x22xf32> to vector<1x22xf32>
    %100 = vector.extract_strided_slice %48 {offsets = [47, 0], sizes = [1, 22], strides = [1, 1]} : vector<80x22xf32> to vector<1x22xf32>
    %101 = vector.extract_strided_slice %48 {offsets = [48, 0], sizes = [1, 22], strides = [1, 1]} : vector<80x22xf32> to vector<1x22xf32>
    %102 = vector.extract_strided_slice %48 {offsets = [49, 0], sizes = [1, 22], strides = [1, 1]} : vector<80x22xf32> to vector<1x22xf32>
    %103 = vector.extract_strided_slice %48 {offsets = [50, 0], sizes = [1, 22], strides = [1, 1]} : vector<80x22xf32> to vector<1x22xf32>
    %104 = vector.extract_strided_slice %48 {offsets = [51, 0], sizes = [1, 22], strides = [1, 1]} : vector<80x22xf32> to vector<1x22xf32>
    %105 = vector.extract_strided_slice %48 {offsets = [52, 0], sizes = [1, 22], strides = [1, 1]} : vector<80x22xf32> to vector<1x22xf32>
    %106 = vector.extract_strided_slice %48 {offsets = [53, 0], sizes = [1, 22], strides = [1, 1]} : vector<80x22xf32> to vector<1x22xf32>
    %107 = vector.extract_strided_slice %48 {offsets = [54, 0], sizes = [1, 22], strides = [1, 1]} : vector<80x22xf32> to vector<1x22xf32>
    %108 = vector.extract_strided_slice %48 {offsets = [55, 0], sizes = [1, 22], strides = [1, 1]} : vector<80x22xf32> to vector<1x22xf32>
    %109 = vector.extract_strided_slice %48 {offsets = [56, 0], sizes = [1, 22], strides = [1, 1]} : vector<80x22xf32> to vector<1x22xf32>
    %110 = vector.extract_strided_slice %48 {offsets = [57, 0], sizes = [1, 22], strides = [1, 1]} : vector<80x22xf32> to vector<1x22xf32>
    %111 = vector.extract_strided_slice %48 {offsets = [58, 0], sizes = [1, 22], strides = [1, 1]} : vector<80x22xf32> to vector<1x22xf32>
    %112 = vector.extract_strided_slice %48 {offsets = [59, 0], sizes = [1, 22], strides = [1, 1]} : vector<80x22xf32> to vector<1x22xf32>
    %113 = vector.extract_strided_slice %48 {offsets = [60, 0], sizes = [1, 22], strides = [1, 1]} : vector<80x22xf32> to vector<1x22xf32>
    %114 = vector.extract_strided_slice %48 {offsets = [61, 0], sizes = [1, 22], strides = [1, 1]} : vector<80x22xf32> to vector<1x22xf32>
    %115 = vector.extract_strided_slice %48 {offsets = [62, 0], sizes = [1, 22], strides = [1, 1]} : vector<80x22xf32> to vector<1x22xf32>
    %116 = vector.extract_strided_slice %48 {offsets = [63, 0], sizes = [1, 22], strides = [1, 1]} : vector<80x22xf32> to vector<1x22xf32>
    %117 = vector.extract_strided_slice %48 {offsets = [64, 0], sizes = [1, 22], strides = [1, 1]} : vector<80x22xf32> to vector<1x22xf32>
    %118 = vector.extract_strided_slice %48 {offsets = [65, 0], sizes = [1, 22], strides = [1, 1]} : vector<80x22xf32> to vector<1x22xf32>
    %119 = vector.extract_strided_slice %48 {offsets = [66, 0], sizes = [1, 22], strides = [1, 1]} : vector<80x22xf32> to vector<1x22xf32>
    %120 = vector.extract_strided_slice %48 {offsets = [67, 0], sizes = [1, 22], strides = [1, 1]} : vector<80x22xf32> to vector<1x22xf32>
    %121 = vector.extract_strided_slice %48 {offsets = [68, 0], sizes = [1, 22], strides = [1, 1]} : vector<80x22xf32> to vector<1x22xf32>
    %122 = vector.extract_strided_slice %48 {offsets = [69, 0], sizes = [1, 22], strides = [1, 1]} : vector<80x22xf32> to vector<1x22xf32>
    %123 = vector.extract_strided_slice %48 {offsets = [70, 0], sizes = [1, 22], strides = [1, 1]} : vector<80x22xf32> to vector<1x22xf32>
    %124 = vector.extract_strided_slice %48 {offsets = [71, 0], sizes = [1, 22], strides = [1, 1]} : vector<80x22xf32> to vector<1x22xf32>
    %125 = vector.extract_strided_slice %48 {offsets = [72, 0], sizes = [1, 22], strides = [1, 1]} : vector<80x22xf32> to vector<1x22xf32>
    %126 = vector.extract_strided_slice %48 {offsets = [73, 0], sizes = [1, 22], strides = [1, 1]} : vector<80x22xf32> to vector<1x22xf32>
    %127 = vector.extract_strided_slice %48 {offsets = [74, 0], sizes = [1, 22], strides = [1, 1]} : vector<80x22xf32> to vector<1x22xf32>
    %128 = vector.extract_strided_slice %48 {offsets = [75, 0], sizes = [1, 22], strides = [1, 1]} : vector<80x22xf32> to vector<1x22xf32>
    %129 = vector.extract_strided_slice %48 {offsets = [76, 0], sizes = [1, 22], strides = [1, 1]} : vector<80x22xf32> to vector<1x22xf32>
    %130 = vector.extract_strided_slice %48 {offsets = [77, 0], sizes = [1, 22], strides = [1, 1]} : vector<80x22xf32> to vector<1x22xf32>
    %131 = vector.extract_strided_slice %48 {offsets = [78, 0], sizes = [1, 22], strides = [1, 1]} : vector<80x22xf32> to vector<1x22xf32>
    %132 = vector.extract_strided_slice %48 {offsets = [79, 0], sizes = [1, 22], strides = [1, 1]} : vector<80x22xf32> to vector<1x22xf32>
    %133 = tpu.concatenate %93, %94, %95, %96, %97, %98, %99, %100, %101, %102, %103, %104, %105, %106, %107, %108 in 1 : vector<1x22xf32>, vector<1x22xf32>, vector<1x22xf32>, vector<1x22xf32>, vector<1x22xf32>, vector<1x22xf32>, vector<1x22xf32>, vector<1x22xf32>, vector<1x22xf32>, vector<1x22xf32>, vector<1x22xf32>, vector<1x22xf32>, vector<1x22xf32>, vector<1x22xf32>, vector<1x22xf32>, vector<1x22xf32> -> vector<1x352xf32>
    %134 = tpu.concatenate %109, %110, %111, %112, %113, %114, %115, %116, %117, %118, %119, %120, %121, %122, %123, %124 in 1 : vector<1x22xf32>, vector<1x22xf32>, vector<1x22xf32>, vector<1x22xf32>, vector<1x22xf32>, vector<1x22xf32>, vector<1x22xf32>, vector<1x22xf32>, vector<1x22xf32>, vector<1x22xf32>, vector<1x22xf32>, vector<1x22xf32>, vector<1x22xf32>, vector<1x22xf32>, vector<1x22xf32>, vector<1x22xf32> -> vector<1x352xf32>
    %135 = tpu.concatenate %125, %126, %127, %128, %129, %130, %131, %132 in 1 : vector<1x22xf32>, vector<1x22xf32>, vector<1x22xf32>, vector<1x22xf32>, vector<1x22xf32>, vector<1x22xf32>, vector<1x22xf32>, vector<1x22xf32> -> vector<1x176xf32>
    %136 = tpu.concatenate %133, %134, %135 in 1 : vector<1x352xf32>, vector<1x352xf32>, vector<1x176xf32> -> vector<1x880xf32>
    %137 = tpu.concatenate %92, %136 in 0 : vector<1x880xf32>, vector<1x880xf32> -> vector<2x880xf32>
    %138 = arith.truncf %137 : vector<2x880xf32> to vector<2x880xbf16>
    %c0_21 = arith.constant 0 : index
    %c0_22 = arith.constant 0 : index
    %139 = vector.load %arg3[%c0_21, %c0_22] : memref<880x180xbf16, #tpu.memory_space<vmem>>, vector<880x180xbf16>
    %cst_23 = arith.constant dense<0.000000e+00> : vector<2x180xf32>
    %140 = tpu.matmul %138, %139, %cst_23 {dimension_numbers = #tpu.dot_dimension_numbers<[1], [0], [0], [1], [0, 0, 1, 1], [], []>} : vector<2x880xbf16>, vector<880x180xbf16>, vector<2x180xf32> -> vector<2x180xf32>
    %c0_24 = arith.constant 0 : index
    %c0_25 = arith.constant 0 : index
    %141 = vector.load %arg4[%c0_24, %c0_25] : memref<1x180xf32, #tpu.memory_space<vmem>>, vector<1x180xf32>
    %142 = vector.broadcast %141 : vector<1x180xf32> to vector<2x180xf32>
    %143 = arith.addf %140, %142 : vector<2x180xf32>
    %c0_26 = arith.constant 0 : index
    %c0_27 = arith.constant 0 : index
    %144 = vector.load %arg5[%c0_26, %c0_27] : memref<2x180xf32, #tpu.memory_space<vmem>>, vector<2x180xf32>
    tpu.vector_store %arg5[%c0_26, %c0_27], %143 {strides = array<i32>} : memref<2x180xf32, #tpu.memory_space<vmem>>, vector<2x180xf32>,
    return
  }
}

</mosaic_0001>

<bundles_post_ra>
// kernel: classifier_forward.1
= control target key start
LH: loop header
LB: loop body
LE: loop exit
PB: predicated region body
PF: predicated region fallthrough
CT: control target
= control target key end

     0   :  { %vm5030_vm0 = vcmask 523264   ;;  %s3461_s20 = smov 44   ;;  %vm701_vm4 = vcmask 1040384   ;;  %vm630_vm7 = vcmask 179200   ;;  %vm641_vm8 = vcmask 359424   ;;  %s3463_s19 = smov 4   ;;  %s5024_s1 = inlined_call_operand.vmem [shape: bf16[464,22], index: 1, kind: input, shape index: {}]   ;;  %s5025_s0 = inlined_call_operand.vmem [shape: bf16[80,320], index: 0, kind: input, shape index: {}]   ;;  %s5026_s2 = inlined_call_operand.vmem [shape: f32[3,22], index: 2, kind: input, shape index: {}]   ;;  %s5027_s3 = inlined_call_operand.vmem [shape: bf16[880,180], index: 3, kind: input, shape index: {}]   ;;  %s5028_s4 = inlined_call_operand.vmem [shape: f32[1,180], index: 4, kind: input, shape index: {}]   ;;  %s5029_s5 = inlined_call_operand.vmem [shape: f32[2,180], index: 5, kind: output, shape index: {}]  }
   0x1   :  { %v2999_v0 = vld [vmem:[%s5024_s1 + $0x38] sm:$0xff]  ;;  %v2998_v3 = vld [vmem:[%s5024_s1 + $0x30] sm:$0xff]  ;;  %v2997_v6 = vld [vmem:[%s5024_s1 + $0x28] sm:$0xff]  ;;  %vm685_vm9 = vcmask 539648   ;;  %s3464_s21 = smov 110   ;;  %s3465_s22 = smov 88  }
   0x2   :  { %v3007_v1 = vld [vmem:[%s5024_s1 + $0x78] sm:$0xff]  ;;  %367 = vmatpush.bf16.msra.mxu0 %v2999_v0  ;;  %v3006_v4 = vld [vmem:[%s5024_s1 + $0x70] sm:$0xff]  ;;  %v3005_v7 = vld [vmem:[%s5024_s1 + $0x68] sm:$0xff]  ;;  %s3466_s23 = smov 26   ;;  %s3467_s24 = smov 70   ;;  %vm1081_vm11 = vcmask 31744  }
   0x3   :  { %v3011_v2 = vld [vmem:[%s5024_s1 + $0x98] sm:$0xff]  ;;  %401 = vmatpush.bf16.msra.mxu1 %v3007_v1  ;;  %v3010_v5 = vld [vmem:[%s5024_s1 + $0x90] sm:$0xff]  ;;  %v3009_v8 = vld [vmem:[%s5024_s1 + $0x88] sm:$0xff]  ;;  %s3468_s25 = smov 92   ;;  %s3469_s26 = smov 8   ;;  %vm1077_vm12 = vcmask 719872  }
   0x4   :  { %439 = vmatpush.bf16.msra.mxu2 %v3011_v2  ;;  %v2996_v9 = vld [vmem:[%s5024_s1 + $0x20] sm:$0xff]  ;;  %v2358_v12 = vld [vmem:[%s5025_s0 + $0x8] sm:$0xf]  ;;  %v2979_v13 = vld [vmem:[%s5025_s0 + $0x10] sm:$0xf0]  ;;  %s3470_s27 = smov 48  }
   0x5   :  { %v3004_v10 = vld [vmem:[%s5024_s1 + $0x60] sm:$0xff]  ;;  %v2995_v14 = vld [vmem:[%s5024_s1 + $0x18] sm:$0xff]  ;;  %v2359_v16 = vor.u32 %v2979_v13, %v2358_v12  ;;  %v2994_v17 = vld [vmem:[%s5024_s1 + $0x10] sm:$0xff]  ;;  %s3471_s28 = smov 30   ;;  %s3472_s29 = smov 52   ;;  %vm1079_vm13 = vcmask 900096  }
   0x6   :  { %368 = vmatpush.bf16.msra.mxu0 %v2998_v3  ;;  %v3008_v11 = vld [vmem:[%s5024_s1 + $0x80] sm:$0xff]  ;;  %v3003_v15 = vld [vmem:[%s5024_s1 + $0x58] sm:$0xff]  ;;  %v3002_v18 = vld [vmem:[%s5024_s1 + $0x50] sm:$0xff]  ;;  %s3473_s30 = smov 114   ;;  %s3474_s6 = smov 74   ;;  %vm1085_vm14 = vcmask 392192  }
   0x7   :  { %402 = vmatpush.bf16.msra.mxu1 %v3006_v4  ;;  %v2993_v19 = vld [vmem:[%s5024_s1 + $0x8] sm:$0xff]  ;;  %v2992_v21 = vld [vmem:[%s5024_s1] sm:$0xff]  ;;  %v2352_v26 = vld [vmem:[%s5025_s0 + $0xc] sm:$0xf0]  ;;  %vm1083_vm15 = vcmask 211968   ;;  %s3476_s14 = smov 64  }
   0x8   :  { %440 = vmatpush.bf16.msra.mxu2 %v3010_v5  ;;  %v3001_v20 = vld [vmem:[%s5024_s1 + $0x48] sm:$0xff]  ;;  %v3000_v22 = vld [vmem:[%s5024_s1 + $0x40] sm:$0xff]  ;;  %v2362_v32 = vld [vmem:[%s5025_s0 + $0x18] sm:$0xf] }
   0x9   :  { %v2350_v23 = vld [vmem:[%s5025_s0] sm:$0xf]  ;;  %v2978_v24 = vld [vmem:[%s5025_s0 + $0x8] sm:$0xf0]  ;;  %v2977_v25 = vld [vmem:[%s5025_s0 + $0x4] sm:$0xf] }
   0xa   :  { %369 = vmatpush.bf16.msra.mxu0 %v2997_v6  ;;  %v2370_v27 = vld [vmem:[%s5025_s0 + $0x20] sm:$0xf]  ;;  %v2982_v28 = vld [vmem:[%s5025_s0 + $0x28] sm:$0xf0]  ;;  %v2351_v29 = vor.u32 %v2978_v24, %v2350_v23  ;;  %v2355_v30 = vor.u32 %v2977_v25, %v2352_v26  ;;  %v2981_v33 = vld [vmem:[%s5025_s0 + $0x20] sm:$0xf0] }
   0xb   :  { %403 = vmatpush.bf16.msra.mxu1 %v3005_v7  ;;  %v2371_v31 = vor.u32 %v2982_v28, %v2370_v27  ;;  %v2980_v34 = vld [vmem:[%s5025_s0 + $0x1c] sm:$0xf]  ;;  %v2364_v35 = vld [vmem:[%s5025_s0 + $0x24] sm:$0xf0]  ;;  %v2382_v36 = vld [vmem:[%s5025_s0 + $0x38] sm:$0xf]  ;;  %v2363_v38 = vor.u32 %v2981_v33, %v2362_v32 }
   0xc   :  { %441 = vmatpush.bf16.msra.mxu2 %v3009_v8  ;;  %v2985_v37 = vld [vmem:[%s5025_s0 + $0x40] sm:$0xf0]  ;;  %v2367_v39 = vor.u32 %v2980_v34, %v2364_v35  ;;  %v2374_v41 = vld [vmem:[%s5025_s0 + $0x30] sm:$0xf]  ;;  %v2984_v42 = vld [vmem:[%s5025_s0 + $0x38] sm:$0xf0] }
   0xd   :  { %v2383_v40 = vor.u32 %v2985_v37, %v2382_v36  ;;  %v2983_v43 = vld [vmem:[%s5025_s0 + $0x34] sm:$0xf]  ;;  %v2376_v44 = vld [vmem:[%s5025_s0 + $0x3c] sm:$0xf0]  ;;  %v2394_v45 = vld [vmem:[%s5025_s0 + $0x50] sm:$0xf]  ;;  %v2375_v47 = vor.u32 %v2984_v42, %v2374_v41 }
   0xe   :  { %370 = vmatpush.bf16.msra.mxu0 %v2996_v9  ;;  %v2988_v46 = vld [vmem:[%s5025_s0 + $0x58] sm:$0xf0]  ;;  %v2379_v48 = vor.u32 %v2983_v43, %v2376_v44  ;;  %v2386_v50 = vld [vmem:[%s5025_s0 + $0x48] sm:$0xf]  ;;  %v2987_v51 = vld [vmem:[%s5025_s0 + $0x50] sm:$0xf0] }
   0xf   :  { %404 = vmatpush.bf16.msra.mxu1 %v3004_v10  ;;  %v2395_v49 = vor.u32 %v2988_v46, %v2394_v45  ;;  %v2986_v52 = vld [vmem:[%s5025_s0 + $0x4c] sm:$0xf]  ;;  %v2388_v53 = vld [vmem:[%s5025_s0 + $0x54] sm:$0xf0]  ;;  %v2406_v54 = vld [vmem:[%s5025_s0 + $0x68] sm:$0xf]  ;;  %v2387_v56 = vor.u32 %v2987_v51, %v2386_v50  ;;  %v24_v10 = vlaneseq }
  0x10   :  { %442 = vmatpush.bf16.msra.mxu2 %v3008_v11  ;;  %v2991_v55 = vld [vmem:[%s5025_s0 + $0x70] sm:$0xf0]  ;;  %v2391_v57 = vor.u32 %v2986_v52, %v2388_v53  ;;  %v2398_v59 = vld [vmem:[%s5025_s0 + $0x60] sm:$0xf]  ;;  %v2990_v60 = vld [vmem:[%s5025_s0 + $0x68] sm:$0xf0] }
  0x11   :  { %v2407_v58 = vor.u32 %v2991_v55, %v2406_v54  ;;  %v2989_v61 = vld [vmem:[%s5025_s0 + $0x64] sm:$0xf]  ;;  %v2400_v62 = vld [vmem:[%s5025_s0 + $0x6c] sm:$0xf0]  ;;  %v2399_v63 = vor.u32 %v2990_v60, %v2398_v59  ;;  %v3665_v2 = vld [vmem:[%s5026_s2] ss:$0 sm:$0xff] }
  0x12   :  { %371 = vmatpush.bf16.msra.mxu0 %v2995_v14  ;;  %v2403_v0 = vor.u32 %v2989_v61, %v2400_v62  ;;  %s3460_s0 = smov 22  }
  0x13   :  { %405 = vmatpush.bf16.msra.mxu1 %v3003_v15  ;;  %2488 = vmatmul.msk.bf16.vlgmr.msra.gmra.mxu2 %vm5030_vm0, %v2359_v16  ;;  %v3669_v15 = vshrl.u32 %v24_v10, 7 }
  0x15   :  { %vm498_vm1 = vcmp.lt.s32.totalorder %v3669_v15, 1  ;;  %vm529_vm2 = vcmp.lt.s32.totalorder %v3669_v15, 7  ;;  %vm35_vm6 = vcmp.eq.s32.totalorder %v3669_v15, 0 }
  0x16   :  { %372 = vmatpush.bf16.msra.mxu0 %v2994_v17 }
  0x17   :  { %406 = vmatpush.bf16.msra.mxu1 %v3002_v18 }
  0x1a   :  { %373 = vmatpush.bf16.msra.mxu0 %v2993_v19 }
  0x1b   :  { %407 = vmatpush.bf16.msra.mxu1 %v3001_v20 }
  0x1e   :  { %374 = vmatpush.bf16.msra.mxu0 %v2992_v21 }
  0x1f   :  { %408 = vmatpush.bf16.msra.mxu1 %v3000_v22 }
  0x21   :  { %375 = vmatmul.bf16.vlgmr.msra.gmra.mxu0 %v2351_v29 }
  0x22   :  { %409 = vmatmul.bf16.vlgmr.msra.gmra.mxu1 %v2355_v30 }
  0x23   :  { %2489 = vmatmul.msk.bf16.gmra.mxu2 %vm5030_vm0, %v2371_v31 }
  0x31   :  { %380 = vmatmul.bf16.gmra.mxu0 %v2363_v38 }
  0x32   :  { %414 = vmatmul.bf16.gmra.mxu1 %v2367_v39 }
  0x33   :  { %2490 = vmatmul.msk.bf16.gmra.mxu2 %vm5030_vm0, %v2383_v40 }
  0x41   :  { %385 = vmatmul.bf16.gmra.mxu0 %v2375_v47 }
  0x42   :  { %419 = vmatmul.bf16.gmra.mxu1 %v2379_v48 }
  0x43   :  { %2491 = vmatmul.msk.bf16.gmra.mxu2 %vm5030_vm0, %v2395_v49 }
  0x51   :  { %390 = vmatmul.bf16.gmra.mxu0 %v2387_v56 }
  0x52   :  { %424 = vmatmul.bf16.gmra.mxu1 %v2391_v57 }
  0x53   :  { %2492 = vmatmul.msk.bf16.gmra.mxu2 %vm5030_vm0, %v2407_v58  ;;  %vm1099_vm0 = vcmask 605184  }
  0x61   :  { %395 = vmatmul.bf16.gmra.mxu0 %v2399_v63 }
  0x62   :  { %429 = vmatmul.bf16.gmra.mxu1 %v2403_v0 }
  0x96   :  { %v444_v1 = vpop.f32.mrf.mxu2 }
  0x9e   :  { %v376_v3 = vpop.f32.mrf.mxu0  ;;  %v446_v6 = vpop.f32.mrf.mxu2 }
  0x9f   :  { %v410_v4 = vpop.f32.mrf.mxu1  ;;  %v377_v5 = vadd.f32 %v3665_v2, %v376_v3 }
  0xa1   :  { %v411_v7 = vadd.f32 %v410_v4, %v377_v5 }
  0xa3   :  { %v445_v11 = vadd.f32 %v444_v1, %v411_v7 }
  0xa5   :  { %v3671_v16 = vmax.f32 %v445_v11, 0.0 }
  0xa6   :  { %v378_v8 = vpop.f32.mrf.mxu0  ;;  %v449_v13 = vpop.f32.mrf.mxu2 }
  0xa7   :  { %v412_v9 = vpop.f32.mrf.mxu1  ;;  %v379_v12 = vadd.f32 %v3665_v2, %v378_v8  ;;  %v488_v21 = vrot.slane %v3671_v16, 7  ;;  %v519_v33 = vrot.slane %v3671_v16, 1 }
  0xa9   :  { %v413_v14 = vadd.f32 %v412_v9, %v379_v12 }
  0xab   :  { %v447_v17 = vadd.f32 %v446_v6, %v413_v14  ;;  %v3721_v14 = vadd.s32 32, %v3669_v15 }
  0xad   :  { %v470_v18 = vmax.f32 %v447_v17, 0.0  ;;  %vm49_vm3 = vcmp.eq.s32.totalorder %v3721_v14, 39 }
  0xae   :  { %v381_v19 = vpop.f32.mrf.mxu0  ;;  %v451_v25 = vpop.f32.mrf.mxu2 }
  0xaf   :  { %v415_v20 = vpop.f32.mrf.mxu1  ;;  %v489_v22 = vrot.slane %v470_v18, 7  ;;  %v382_v23 = vadd.f32 %v3665_v2, %v381_v19  ;;  %v3147_v24 = vpack.i.bf16 %v470_v18, %v3671_v16  ;;  %v520_v29 = vrot.slane %v470_v18, 1  ;;  %v3014_v16 = vld [vmem:[%s5024_s1 + $0xb0] sm:$0xff] }
  0xb1   :  { %v416_v26 = vadd.f32 %v415_v20, %v382_v23  ;;  %3148 = vrot.lane.b32.xlu0 %v3147_v24, %s3460_s0  ;;  %v3682_v27 = vsel %vm498_vm1, %v488_v21, %v489_v22  ;;  %v538_v40 = vsel %vm529_vm2, %v519_v33, %v520_v29  ;;  %v487_v20 = vld [vmem:[%s5024_s1 + $0xc0] sm:$0x1] }
  0xb3   :  { %v450_v28 = vadd.f32 %v449_v13, %v416_v26 }
  0xb5   :  { %v471_v30 = vmax.f32 %v450_v28, 0.0 }
  0xb6   :  { %v383_v31 = vpop.f32.mrf.mxu0  ;;  %v454_v37 = vpop.f32.mrf.mxu2 }
  0xb7   :  { %v417_v32 = vpop.f32.mrf.mxu1  ;;  %v490_v34 = vrot.slane %v471_v30, 7  ;;  %v521_v35 = vrot.slane %v471_v30, 1  ;;  %v384_v36 = vadd.f32 %v3665_v2, %v383_v31 }
  0xb9   :  { %v418_v38 = vadd.f32 %v417_v32, %v384_v36  ;;  %v537_v39 = vsel %vm529_vm2, %v520_v29, %v521_v35  ;;  %v3695_v41 = vsel %vm498_vm1, %v489_v22, %v490_v34 }
  0xba   :  { %v3152_v42 = vpack.i.bf16 %v537_v39, %v538_v40 }
  0xbb   :  { %v452_v43 = vadd.f32 %v451_v25, %v418_v38  ;;  %v675_v25 = vunpack.c.l.b16 %v487_v20 }
  0xbc   :  { %3153 = vrot.lane.b32.xlu0 %v3152_v42, %s3461_s20 }
  0xbd   :  { %v472_v44 = vmax.f32 %v452_v43, 0.0 }
  0xbe   :  { %v386_v45 = vpop.f32.mrf.mxu0  ;;  %v456_v51 = vpop.f32.mrf.mxu2 }
  0xbf   :  { %v420_v46 = vpop.f32.mrf.mxu1  ;;  %v491_v47 = vrot.slane %v472_v44, 7  ;;  %v387_v48 = vadd.f32 %v3665_v2, %v386_v45  ;;  %v3157_v49 = vpack.i.bf16 %v472_v44, %v471_v30  ;;  %v522_v54 = vrot.slane %v472_v44, 1 }
  0xc0   :  { %v680_v30 = vpack.c.b16 %v675_v25, %v675_v25 }
  0xc1   :  { %v421_v50 = vadd.f32 %v420_v46, %v387_v48  ;;  %3158 = vrot.lane.b32.xlu1 %v3157_v49, %s3460_s0  ;;  %v3702_v52 = vsel %vm498_vm1, %v490_v34, %v491_v47  ;;  %v536_v63 = vsel %vm529_vm2, %v521_v35, %v522_v54 }
  0xc3   :  { %v455_v53 = vadd.f32 %v454_v37, %v421_v50  ;;  %v703_v37 = vsel %vm701_vm4, %v680_v30, 0  ;;  %v3797_v30 = vadd.s32 40, %v3669_v15 }
  0xc4   :  { %708 = vmatpush.bf16.msra.mxu3 %v703_v37 }
  0xc5   :  { %v473_v55 = vmax.f32 %v455_v53, 0.0  ;;  %vm60_vm10 = vcmp.eq.s32.totalorder %v3797_v30, 40 }
  0xc6   :  { %v388_v56 = vpop.f32.mrf.mxu0  ;;  %v459_v4 = vpop.f32.mrf.mxu2 }
  0xc7   :  { %v422_v57 = vpop.f32.mrf.mxu1  ;;  %v492_v58 = vrot.slane %v473_v55, 7  ;;  %v523_v59 = vrot.slane %v473_v55, 1  ;;  %v389_v60 = vadd.f32 %v3665_v2, %v388_v56 }
  0xc9   :  { %v423_v61 = vadd.f32 %v422_v57, %v389_v60  ;;  %v535_v62 = vsel %vm529_vm2, %v522_v54, %v523_v59  ;;  %v3711_v0 = vsel %vm498_vm1, %v491_v47, %v492_v58 }
  0xca   :  { %v3162_v1 = vpack.i.bf16 %v535_v62, %v536_v63 }
  0xcb   :  { %v457_v3 = vadd.f32 %v456_v51, %v423_v61 }
  0xcc   :  { %3163 = vrot.lane.b32.xlu1 %v3162_v1, %s3461_s20 }
  0xcd   :  { %v474_v5 = vmax.f32 %v457_v3, 0.0  ;;  %v3756_v3 = vadd.s32 72, %v3669_v15 }
  0xce   :  { %v391_v6 = vpop.f32.mrf.mxu0  ;;  %v461_v19 = vpop.f32.mrf.mxu2 }
  0xcf   :  { %v425_v7 = vpop.f32.mrf.mxu1  ;;  %v493_v8 = vrot.slane %v474_v5, 7  ;;  %v392_v9 = vadd.f32 %v3665_v2, %v391_v6  ;;  %v3167_v10 = vpack.i.bf16 %v474_v5, %v473_v55  ;;  %v524_v13 = vrot.slane %v474_v5, 1 }
  0xd0   :  { %vm84_vm5 = vcmp.eq.s32.totalorder %v3756_v3, 79 }
  0xd1   :  { %v426_v11 = vadd.f32 %v425_v7, %v392_v9  ;;  %3168 = vrot.lane.b32.xlu2 %v3167_v10, %s3460_s0  ;;  %v3718_v12 = vsel %vm498_vm1, %v492_v58, %v493_v8  ;;  %v534_v24 = vsel %vm529_vm2, %v523_v59, %v524_v13 }
  0xd2   :  { %v544_v34 = vsel %vm49_vm3, 0.0, %v534_v24 }
  0xd3   :  { %v460_v17 = vadd.f32 %v459_v4, %v426_v11 }
  0xd5   :  { %v475_v18 = vmax.f32 %v460_v17, 0.0  ;;  %v3015_v17 = vld [vmem:[%s5024_s1 + $0xb8] sm:$0xff] }
  0xd6   :  { %v393_v22 = vpop.f32.mrf.mxu0  ;;  %v464_v46 = vpop.f32.mrf.mxu2  ;;  %709 = vmatpush.bf16.msra.mxu3 %v3015_v17 }
  0xd7   :  { %v427_v23 = vpop.f32.mrf.mxu1  ;;  %v494_v26 = vrot.slane %v475_v18, 7  ;;  %v525_v28 = vrot.slane %v475_v18, 1  ;;  %v394_v29 = vadd.f32 %v3665_v2, %v393_v22 }
  0xd9   :  { %v428_v31 = vadd.f32 %v427_v23, %v394_v29  ;;  %v533_v32 = vsel %vm529_vm2, %v524_v13, %v525_v28  ;;  %v3736_v35 = vsel %vm498_vm1, %v493_v8, %v494_v26 }
  0xda   :  { %v3172_v36 = vpack.i.bf16 %v533_v32, %v544_v34  ;;  %710 = vmatpush.bf16.msra.mxu3 %v3014_v16 }
  0xdb   :  { %v462_v38 = vadd.f32 %v461_v19, %v428_v31 }
  0xdc   :  { %3173 = vrot.lane.b32.xlu2 %v3172_v36, %s3461_s20 }
  0xdd   :  { %v476_v39 = vmax.f32 %v462_v38, 0.0 }
  0xde   :  { %v396_v40 = vpop.f32.mrf.mxu0  ;;  %v466_v62 = vpop.f32.mrf.mxu2 }
  0xdf   :  { %v430_v42 = vpop.f32.mrf.mxu1  ;;  %v495_v43 = vrot.slane %v476_v39, 7  ;;  %v397_v44 = vadd.f32 %v3665_v2, %v396_v40  ;;  %v3177_v45 = vpack.i.bf16 %v476_v39, %v475_v18  ;;  %v526_v50 = vrot.slane %v476_v39, 1 }
  0xe1   :  { %v431_v47 = vadd.f32 %v430_v42, %v397_v44  ;;  %3178 = vrot.lane.b32.xlu0 %v3177_v45, %s3460_s0  ;;  %v3744_v48 = vsel %vm498_vm1, %v494_v26, %v495_v43  ;;  %v532_v60 = vsel %vm529_vm2, %v525_v28, %v526_v50 }
  0xe3   :  { %v465_v49 = vadd.f32 %v464_v46, %v431_v47 }
  0xe5   :  { %v477_v51 = vmax.f32 %v465_v49, 0.0 }
  0xe6   :  { %v398_v53 = vpop.f32.mrf.mxu0 }
  0xe7   :  { %v496_v54 = vrot.slane %v477_v51, 7  ;;  %v527_v55 = vrot.slane %v477_v51, 1  ;;  %v399_v56 = vadd.f32 %v3665_v2, %v398_v53  ;;  %v432_v57 = vpop.f32.mrf.mxu1 }
  0xe9   :  { %v433_v58 = vadd.f32 %v432_v57, %v399_v56  ;;  %v531_v59 = vsel %vm529_vm2, %v526_v50, %v527_v55  ;;  %v3753_v61 = vsel %vm498_vm1, %v495_v43, %v496_v54 }
  0xea   :  { %v3182_v63 = vpack.i.bf16 %v531_v59, %v532_v60 }
  0xeb   :  { %v467_v1 = vadd.f32 %v466_v62, %v433_v58 }
  0xec   :  { %3183 = vrot.lane.b32.xlu1 %v3182_v63, %s3461_s20 }
  0xed   :  { %v478_v2 = vmax.f32 %v467_v1, 0.0 }
  0xef   :  { %v497_v4 = vrot.slane %v478_v2, 7  ;;  %v528_v5 = vrot.slane %v478_v2, 1  ;;  %v3187_v6 = vpack.i.bf16 %v478_v2, %v477_v51 }
  0xf1   :  { %3188 = vrot.lane.b32.xlu2 %v3187_v6, %s3460_s0  ;;  %v530_v7 = vsel %vm529_vm2, %v527_v55, %v528_v5  ;;  %v539_v8 = vsel %vm529_vm2, %v528_v5, %v519_v33  ;;  %v508_v9 = vsel %vm498_vm1, %v497_v4, %v488_v21  ;;  %v3773_v10 = vsel %vm498_vm1, %v496_v54, %v497_v4  ;;  %v3013_v21 = vld [vmem:[%s5024_s1 + $0xa8] sm:$0xff]  ;;  %v3012_v33 = vld [vmem:[%s5024_s1 + $0xa0] sm:$0xff] }
  0xf2   :  { %v549_v11 = vsel %vm84_vm5, 0.0, %v539_v8  ;;  %711 = vmatpush.bf16.msra.mxu3 %v3013_v21  ;;  %v509_v24 = vsel %vm35_vm6, 0.0, %v508_v9 }
  0xf3   :  { %v3192_v13 = vpack.i.bf16 %v549_v11, %v530_v7 }
  0xf5   :  { %3193 = vrot.lane.b32.xlu0 %v3192_v13, %s3461_s20 }
  0xf6   :  { %712 = vmatpush.bf16.msra.mxu3 %v3012_v33 }
 0x123   :  { %v3149_v18 = vpop.permute.xlu0 %3148 }
 0x124   :  { %v3151_v19 = vunpack.i.h.bf16 %v3149_v18  ;;  %v3150_v20 = vunpack.i.l.bf16 %v3149_v18  ;;  %v3836_v18 = vld [vmem:[%s5026_s2 + $0x1] ss:$0 sm:$0xff] }
 0x126   :  { %v631_v28 = vsel %vm630_vm7, %v509_v24, %v3150_v20  ;;  %v632_v29 = vsel %vm630_vm7, %v3682_v27, %v3151_v19  ;;  %v514_v27 = vsel %vm60_vm10, 0.0, %v3718_v12 }
 0x12b   :  { %v3169_v22 = vpop.permute.xlu2 %3168 }
 0x12c   :  { %v3171_v36 = vunpack.i.h.bf16 %v3169_v22  ;;  %v3170_v37 = vunpack.i.l.bf16 %v3169_v22 }
 0x12e   :  { %v3154_v23 = vpop.permute.xlu0 %3153  ;;  %v635_v43 = vsel %vm630_vm7, %v3711_v0, %v3170_v37  ;;  %v636_v44 = vsel %vm630_vm7, %v514_v27, %v3171_v36 }
 0x12f   :  { %v3156_v25 = vunpack.i.h.bf16 %v3154_v23  ;;  %v3155_v26 = vunpack.i.l.bf16 %v3154_v23 }
 0x131   :  { %v642_v31 = vsel %vm641_vm8, %v631_v28, %v3155_v26  ;;  %v643_v32 = vsel %vm641_vm8, %v632_v29, %v3156_v25 }
 0x132   :  { %v652_v34 = vpack.c.bf16 %v643_v32, %v642_v31 }
 0x133   :  { %v3159_v38 = vpop.permute.xlu1 %3158 }
 0x134   :  { %2509 = vmatmul.msk.bf16.vlgmr.msra.gmra.mxu3 %vm685_vm9, %v652_v34  ;;  %v3161_v49 = vunpack.i.h.bf16 %v3159_v38  ;;  %v3160_v50 = vunpack.i.l.bf16 %v3159_v38 }
 0x136   :  { %v3174_v39 = vpop.permute.xlu2 %3173  ;;  %v633_v12 = vsel %vm630_vm7, %v3695_v41, %v3160_v50  ;;  %v634_v55 = vsel %vm630_vm7, %v3702_v52, %v3161_v49 }
 0x137   :  { %v3176_v40 = vunpack.i.h.bf16 %v3174_v39  ;;  %v3175_v42 = vunpack.i.l.bf16 %v3174_v39 }
 0x139   :  { %v646_v45 = vsel %vm641_vm8, %v635_v43, %v3175_v42  ;;  %v647_v46 = vsel %vm641_vm8, %v636_v44, %v3176_v40 }
 0x13a   :  { %v654_v47 = vpack.c.bf16 %v647_v46, %v646_v45 }
 0x13e   :  { %v3164_v51 = vpop.permute.xlu1 %3163 }
 0x13f   :  { %v3166_v53 = vunpack.i.h.bf16 %v3164_v51  ;;  %v3165_v54 = vunpack.i.l.bf16 %v3164_v51 }
 0x141   :  { %v644_v0 = vsel %vm641_vm8, %v633_v12, %v3165_v54  ;;  %v645_v56 = vsel %vm641_vm8, %v634_v55, %v3166_v53  ;;  %v757_v55 = vld [vmem:[%s5024_s1 + $0xe4] sm:$0x1] }
 0x142   :  { %v653_v57 = vpack.c.bf16 %v645_v56, %v644_v0  ;;  %v941_v0 = vunpack.c.l.b16 %v757_v55 }
 0x144   :  { %2510 = vmatmul.msk.bf16.gmra.mxu3 %vm685_vm9, %v653_v57 }
 0x14b   :  { %v3189_v5 = vpop.permute.xlu2 %3188 }
 0x14c   :  { %v3191_v7 = vunpack.i.h.bf16 %v3189_v5  ;;  %v3190_v8 = vunpack.i.l.bf16 %v3189_v5 }
 0x14e   :  { %v640_v17 = vsel %vm630_vm7, %v3773_v10, %v3191_v7 }
 0x153   :  { %v3179_v58 = vpop.permute.xlu0 %3178 }
 0x154   :  { %2511 = vmatmul.msk.bf16.gmra.mxu3 %vm685_vm9, %v654_v47  ;;  %v3181_v59 = vunpack.i.h.bf16 %v3179_v58  ;;  %v3180_v60 = vunpack.i.l.bf16 %v3179_v58 }
 0x156   :  { %v638_v41 = vsel %vm630_vm7, %v3744_v48, %v3181_v59  ;;  %v637_v52 = vsel %vm630_vm7, %v3736_v35, %v3180_v60  ;;  %v639_v48 = vsel %vm630_vm7, %v3753_v61, %v3190_v8 }
 0x15e   :  { %v3184_v62 = vpop.permute.xlu1 %3183 }
 0x15f   :  { %v3186_v63 = vunpack.i.h.bf16 %v3184_v62  ;;  %v3185_v1 = vunpack.i.l.bf16 %v3184_v62  ;;  %v946_v62 = vpack.c.b16 %v941_v0, %v941_v0  ;;  %v3016_v0 = vld [vmem:[%s5024_s1 + $0xc4] sm:$0xff] }
 0x161   :  { %v648_v2 = vsel %vm641_vm8, %v637_v52, %v3185_v1  ;;  %v649_v4 = vsel %vm641_vm8, %v638_v41, %v3186_v63  ;;  %v967_v1 = vsel %vm701_vm4, %v946_v62, 0 }
 0x162   :  { %v655_v6 = vpack.c.bf16 %v649_v4, %v648_v2  ;;  %972 = vmatpush.bf16.msrb.mxu2 %v967_v1  ;;  %v3019_v4 = vld [vmem:[%s5024_s1 + $0xdc] sm:$0xff] }
 0x164   :  { %2512 = vmatmul.msk.bf16.gmra.mxu3 %vm685_vm9, %v655_v6 }
 0x166   :  { %973 = vmatpush.bf16.msrb.mxu2 %v3019_v4 }
 0x167   :  { %v3194_v9 = vpop.permute.xlu0 %3193 }
 0x168   :  { %v3196_v11 = vunpack.i.h.bf16 %v3194_v9  ;;  %v3195_v13 = vunpack.i.l.bf16 %v3194_v9 }
 0x16a   :  { %v650_v35 = vsel %vm641_vm8, %v639_v48, %v3195_v13  ;;  %v651_v16 = vsel %vm641_vm8, %v640_v17, %v3196_v11  ;;  %v3018_v11 = vld [vmem:[%s5024_s1 + $0xd4] sm:$0xff] }
 0x16b   :  { %v656_v21 = vpack.c.bf16 %v651_v16, %v650_v35  ;;  %974 = vmatpush.bf16.msrb.mxu2 %v3018_v11  ;;  %v3017_v35 = vld [vmem:[%s5024_s1 + $0xcc] sm:$0xff] }
 0x16f   :  { %975 = vmatpush.bf16.msrb.mxu2 %v3017_v35 }
 0x173   :  { %976 = vmatpush.bf16.msrb.mxu2 %v3016_v0  ;;  %v3992_v0 = vld [vmem:[%s5026_s2 + $0x2] ss:$0 sm:$0xff]  ;;  %s3462_s2 = smov 66  }
 0x174   :  { %2513 = vmatmul.msk.bf16.gmra.mxu3 %vm685_vm9, %v656_v21 }
 0x1b7   :  { %v714_v33 = vpop.f32.mrf.mxu3 }
 0x1b8   :  { %v715_v19 = vadd.f32 %v3836_v18, %v714_v33 }
 0x1ba   :  { %v3839_v10 = vmax.f32 %v715_v19, 0.0 }
 0x1bc   :  { %v758_v23 = vrot.slane %v3839_v10, 7  ;;  %v788_v34 = vrot.slane %v3839_v10, 1 }
 0x1bf   :  { %v716_v20 = vpop.f32.mrf.mxu3 }
 0x1c0   :  { %v717_v61 = vadd.f32 %v3836_v18, %v716_v20 }
 0x1c2   :  { %v740_v22 = vmax.f32 %v717_v61, 0.0 }
 0x1c4   :  { %v759_v24 = vrot.slane %v740_v22, 7  ;;  %v3197_v25 = vpack.i.bf16 %v740_v22, %v3839_v10  ;;  %v789_v31 = vrot.slane %v740_v22, 1 }
 0x1c6   :  { %3198 = vrot.lane.b32.xlu1 %v3197_v25, %s3460_s0  ;;  %v3849_v26 = vsel %vm498_vm1, %v758_v23, %v759_v24  ;;  %v806_v39 = vsel %vm529_vm2, %v788_v34, %v789_v31 }
 0x1c7   :  { %v719_v28 = vpop.f32.mrf.mxu3 }
 0x1c8   :  { %v720_v29 = vadd.f32 %v3836_v18, %v719_v28 }
 0x1ca   :  { %v741_v32 = vmax.f32 %v720_v29, 0.0 }
 0x1cc   :  { %v760_v36 = vrot.slane %v741_v32, 7  ;;  %v790_v37 = vrot.slane %v741_v32, 1 }
 0x1ce   :  { %v805_v38 = vsel %vm529_vm2, %v789_v31, %v790_v37  ;;  %v3861_v27 = vsel %vm498_vm1, %v759_v24, %v760_v36 }
 0x1cf   :  { %v721_v40 = vpop.f32.mrf.mxu3  ;;  %v3202_v42 = vpack.i.bf16 %v805_v38, %v806_v39 }
 0x1d0   :  { %v722_v43 = vadd.f32 %v3836_v18, %v721_v40 }
 0x1d1   :  { %3203 = vrot.lane.b32.xlu2 %v3202_v42, %s3461_s20 }
 0x1d2   :  { %v742_v44 = vmax.f32 %v722_v43, 0.0 }
 0x1d4   :  { %v761_v45 = vrot.slane %v742_v44, 7  ;;  %v3207_v46 = vpack.i.bf16 %v742_v44, %v741_v32  ;;  %v791_v51 = vrot.slane %v742_v44, 1 }
 0x1d6   :  { %3208 = vrot.lane.b32.xlu0 %v3207_v46, %s3460_s0  ;;  %v3868_v47 = vsel %vm498_vm1, %v760_v36, %v761_v45  ;;  %v804_v57 = vsel %vm529_vm2, %v790_v37, %v791_v51 }
 0x1d7   :  { %v724_v49 = vpop.f32.mrf.mxu3 }
 0x1d8   :  { %v725_v50 = vadd.f32 %v3836_v18, %v724_v49 }
 0x1da   :  { %v743_v53 = vmax.f32 %v725_v50, 0.0 }
 0x1dc   :  { %v762_v54 = vrot.slane %v743_v53, 7  ;;  %v792_v12 = vrot.slane %v743_v53, 1 }
 0x1de   :  { %v803_v56 = vsel %vm529_vm2, %v791_v51, %v792_v12  ;;  %v3880_v58 = vsel %vm498_vm1, %v761_v45, %v762_v54 }
 0x1df   :  { %v726_v59 = vpop.f32.mrf.mxu3  ;;  %v3212_v60 = vpack.i.bf16 %v803_v56, %v804_v57 }
 0x1e0   :  { %v727_v63 = vadd.f32 %v3836_v18, %v726_v59 }
 0x1e1   :  { %3213 = vrot.lane.b32.xlu1 %v3212_v60, %s3461_s20 }
 0x1e2   :  { %v744_v41 = vmax.f32 %v727_v63, 0.0 }
 0x1e4   :  { %v763_v52 = vrot.slane %v744_v41, 7  ;;  %v3217_v2 = vpack.i.bf16 %v744_v41, %v743_v53  ;;  %v793_v6 = vrot.slane %v744_v41, 1 }
 0x1e6   :  { %3218 = vrot.lane.b32.xlu2 %v3217_v2, %s3460_s0  ;;  %v3891_v5 = vsel %vm498_vm1, %v762_v54, %v763_v52  ;;  %v802_v13 = vsel %vm529_vm2, %v792_v12, %v793_v6 }
 0x1e7   :  { %v729_v7 = vpop.f32.mrf.mxu3  ;;  %v812_v21 = vsel %vm49_vm3, 0.0, %v802_v13  ;;  %vm1091_vm3 = vcmask 932864  }
 0x1e8   :  { %v730_v8 = vadd.f32 %v3836_v18, %v729_v7 }
 0x1ea   :  { %v745_v9 = vmax.f32 %v730_v8, 0.0 }
 0x1ec   :  { %v764_v17 = vrot.slane %v745_v9, 7  ;;  %v794_v48 = vrot.slane %v745_v9, 1 }
 0x1ee   :  { %v801_v16 = vsel %vm529_vm2, %v793_v6, %v794_v48  ;;  %v3908_v33 = vsel %vm498_vm1, %v763_v52, %v764_v17 }
 0x1ef   :  { %v731_v19 = vpop.f32.mrf.mxu3  ;;  %v3222_v20 = vpack.i.bf16 %v801_v16, %v812_v21  ;;  %v783_v21 = vsel %vm60_vm10, 0.0, %v3891_v5  ;;  %vm1097_vm10 = vcmask 424960  }
 0x1f0   :  { %v732_v61 = vadd.f32 %v3836_v18, %v731_v19 }
 0x1f1   :  { %3223 = vrot.lane.b32.xlu0 %v3222_v20, %s3461_s20 }
 0x1f2   :  { %v746_v22 = vmax.f32 %v732_v61, 0.0 }
 0x1f4   :  { %v765_v24 = vrot.slane %v746_v22, 7  ;;  %v3227_v25 = vpack.i.bf16 %v746_v22, %v745_v9  ;;  %v795_v31 = vrot.slane %v746_v22, 1 }
 0x1f6   :  { %3228 = vrot.lane.b32.xlu1 %v3227_v25, %s3460_s0  ;;  %v3915_v14 = vsel %vm498_vm1, %v764_v17, %v765_v24  ;;  %v800_v39 = vsel %vm529_vm2, %v794_v48, %v795_v31 }
 0x1f7   :  { %v734_v28 = vpop.f32.mrf.mxu3 }
 0x1f8   :  { %v735_v29 = vadd.f32 %v3836_v18, %v734_v28 }
 0x1fa   :  { %v747_v32 = vmax.f32 %v735_v29, 0.0 }
 0x1fc   :  { %v766_v36 = vrot.slane %v747_v32, 7  ;;  %v796_v37 = vrot.slane %v747_v32, 1 }
 0x1fe   :  { %v799_v38 = vsel %vm529_vm2, %v795_v31, %v796_v37  ;;  %v3924_v40 = vsel %vm498_vm1, %v765_v24, %v766_v36 }
 0x1ff   :  { %v736_v42 = vpop.f32.mrf.mxu3  ;;  %v3232_v43 = vpack.i.bf16 %v799_v38, %v800_v39 }
 0x200   :  { %v737_v44 = vadd.f32 %v3836_v18, %v736_v42 }
 0x201   :  { %3233 = vrot.lane.b32.xlu2 %v3232_v43, %s3461_s20 }
 0x202   :  { %v748_v45 = vmax.f32 %v737_v44, 0.0 }
 0x204   :  { %v767_v46 = vrot.slane %v748_v45, 7  ;;  %v797_v49 = vrot.slane %v748_v45, 1  ;;  %v3237_v50 = vpack.i.bf16 %v748_v45, %v747_v32 }
 0x206   :  { %3238 = vrot.lane.b32.xlu0 %v3237_v50, %s3460_s0  ;;  %v798_v51 = vsel %vm529_vm2, %v796_v37, %v797_v49  ;;  %v807_v53 = vsel %vm529_vm2, %v797_v49, %v788_v34  ;;  %v777_v18 = vsel %vm498_vm1, %v767_v46, %v758_v23  ;;  %v3941_v54 = vsel %vm498_vm1, %v766_v36, %v767_v46 }
 0x207   :  { %v817_v12 = vsel %vm84_vm5, 0.0, %v807_v53  ;;  %v778_v60 = vsel %vm35_vm6, 0.0, %v777_v18  ;;  %vm1087_vm1 = vcmask 572416   ;;  %vm1089_vm2 = vcmask 752640  }
 0x208   :  { %v3242_v55 = vpack.i.bf16 %v817_v12, %v798_v51  ;;  %vm1093_vm5 = vcmask 64512   ;;  %vm1095_vm6 = vcmask 244736  }
 0x20a   :  { %3243 = vrot.lane.b32.xlu1 %v3242_v55, %s3461_s20 }
 0x22b   :  { %v3204_v34 = vpop.permute.xlu2 %3203 }
 0x22c   :  { %v3206_v23 = vunpack.i.h.bf16 %v3204_v34  ;;  %v3205_v59 = vunpack.i.l.bf16 %v3204_v34 }
 0x238   :  { %v3199_v10 = vpop.permute.xlu1 %3198 }
 0x239   :  { %v3201_v56 = vunpack.i.h.bf16 %v3199_v10  ;;  %v3200_v57 = vunpack.i.l.bf16 %v3199_v10 }
 0x23b   :  { %v898_v3 = vsel %vm630_vm7, %v778_v60, %v3200_v57  ;;  %v899_v62 = vsel %vm630_vm7, %v3849_v26, %v3201_v56 }
 0x23c   :  { %v908_v63 = vsel %vm641_vm8, %v898_v3, %v3205_v59  ;;  %v909_v1 = vsel %vm641_vm8, %v899_v62, %v3206_v23 }
 0x23d   :  { %v918_v41 = vpack.c.bf16 %v909_v1, %v908_v63 }
 0x23f   :  { %2530 = vmatmul.msk.bf16.vlgmr.msrb.gmra.mxu2 %vm685_vm9, %v918_v41 }
 0x240   :  { %v3219_v17 = vpop.permute.xlu2 %3218 }
 0x241   :  { %v3221_v48 = vunpack.i.h.bf16 %v3219_v17  ;;  %v3220_v35 = vunpack.i.l.bf16 %v3219_v17 }
 0x243   :  { %v903_v20 = vsel %vm630_vm7, %v783_v21, %v3221_v48 }
 0x248   :  { %v3209_v52 = vpop.permute.xlu0 %3208 }
 0x249   :  { %v3211_v2 = vunpack.i.h.bf16 %v3209_v52  ;;  %v3210_v4 = vunpack.i.l.bf16 %v3209_v52 }
 0x24b   :  { %v900_v15 = vsel %vm630_vm7, %v3861_v27, %v3210_v4  ;;  %v901_v9 = vsel %vm630_vm7, %v3868_v47, %v3211_v2  ;;  %v902_v47 = vsel %vm630_vm7, %v3880_v58, %v3220_v35 }
 0x253   :  { %v3214_v6 = vpop.permute.xlu1 %3213 }
 0x254   :  { %v3216_v7 = vunpack.i.h.bf16 %v3214_v6  ;;  %v3215_v8 = vunpack.i.l.bf16 %v3214_v6 }
 0x256   :  { %v910_v26 = vsel %vm641_vm8, %v900_v15, %v3215_v8  ;;  %v911_v11 = vsel %vm641_vm8, %v901_v9, %v3216_v7 }
 0x257   :  { %v919_v13 = vpack.c.bf16 %v911_v11, %v910_v26 }
 0x259   :  { %2531 = vmatmul.msk.bf16.gmra.mxu2 %vm685_vm9, %v919_v13 }
 0x25b   :  { %v3234_v24 = vpop.permute.xlu2 %3233 }
 0x25c   :  { %v3236_v30 = vunpack.i.h.bf16 %v3234_v24  ;;  %v3235_v5 = vunpack.i.l.bf16 %v3234_v24 }
 0x263   :  { %v3224_v16 = vpop.permute.xlu0 %3223 }
 0x264   :  { %v3226_v19 = vunpack.i.h.bf16 %v3224_v16  ;;  %v3225_v27 = vunpack.i.l.bf16 %v3224_v16 }
 0x266   :  { %v912_v61 = vsel %vm641_vm8, %v902_v47, %v3225_v27  ;;  %v913_v22 = vsel %vm641_vm8, %v903_v20, %v3226_v19 }
 0x267   :  { %v920_v25 = vpack.c.bf16 %v913_v22, %v912_v61 }
 0x268   :  { %v3229_v28 = vpop.permute.xlu1 %3228 }
 0x269   :  { %v3231_v29 = vunpack.i.h.bf16 %v3229_v28  ;;  %v3230_v31 = vunpack.i.l.bf16 %v3229_v28  ;;  %2532 = vmatmul.msk.bf16.gmra.mxu2 %vm685_vm9, %v920_v25 }
 0x26b   :  { %v905_v32 = vsel %vm630_vm7, %v3915_v14, %v3231_v29  ;;  %v904_v36 = vsel %vm630_vm7, %v3908_v33, %v3230_v31 }
 0x26c   :  { %v914_v58 = vsel %vm641_vm8, %v904_v36, %v3235_v5  ;;  %v915_v37 = vsel %vm641_vm8, %v905_v32, %v3236_v30 }
 0x26d   :  { %v921_v38 = vpack.c.bf16 %v915_v37, %v914_v58 }
 0x278   :  { %v3239_v39 = vpop.permute.xlu0 %3238 }
 0x279   :  { %2533 = vmatmul.msk.bf16.gmra.mxu2 %vm685_vm9, %v921_v38  ;;  %v3241_v42 = vunpack.i.h.bf16 %v3239_v39  ;;  %v3240_v43 = vunpack.i.l.bf16 %v3239_v39 }
 0x27b   :  { %v907_v49 = vsel %vm630_vm7, %v3941_v54, %v3241_v42  ;;  %v906_v14 = vsel %vm630_vm7, %v3924_v40, %v3240_v43 }
 0x27c   :  { %v3244_v44 = vpop.permute.xlu1 %3243 }
 0x27d   :  { %v3246_v45 = vunpack.i.h.bf16 %v3244_v44  ;;  %v3245_v46 = vunpack.i.l.bf16 %v3244_v44 }
 0x27f   :  { %v916_v33 = vsel %vm641_vm8, %v906_v14, %v3245_v46  ;;  %v917_v50 = vsel %vm641_vm8, %v907_v49, %v3246_v45 }
 0x280   :  { %v922_v51 = vpack.c.bf16 %v917_v50, %v916_v33 }
 0x289   :  { %2534 = vmatmul.msk.bf16.gmra.mxu2 %vm685_vm9, %v922_v51 }
 0x2c2   :  { %v978_v53 = vpop.f32.mrf.mxu2 }
 0x2c3   :  { %v979_v40 = vadd.f32 %v3992_v0, %v978_v53 }
 0x2c5   :  { %v3997_v34 = vmax.f32 %v979_v40, 0.0 }
 0x2c7   :  { %v1022_v59 = vrot.slane %v3997_v34, 3  ;;  %v1018_v60 = vrot.slane %v3997_v34, 2  ;;  %v1014_v63 = vrot.slane %v3997_v34, 1  ;;  %v1034_v9 = vrot.slane %v3997_v34, 6 }
 0x2c8   :  { %v1030_v26 = vrot.slane %v3997_v34, 5  ;;  %v1026_v11 = vrot.slane %v3997_v34, 4 }
 0x2ca   :  { %v980_v18 = vpop.f32.mrf.mxu2 }
 0x2cb   :  { %v981_v57 = vadd.f32 %v3992_v0, %v980_v18 }
 0x2cd   :  { %v4009_v41 = vmax.f32 %v981_v57, 0.0 }
 0x2cf   :  { %v1046_v13 = vrot.slane %v4009_v41, 1  ;;  %v1058_v17 = vrot.slane %v4009_v41, 4  ;;  %v1054_v48 = vrot.slane %v4009_v41, 3  ;;  %v1050_v35 = vrot.slane %v4009_v41, 2 }
 0x2d0   :  { %v1066_v19 = vrot.slane %v4009_v41, 6  ;;  %v1062_v27 = vrot.slane %v4009_v41, 5  ;;  %v1070_v22 = vrot.slane %v4009_v41, 7 }
 0x2dc   :  { %v983_v12 = vpop.f32.mrf.mxu2 }
 0x2dd   :  { %v984_v20 = vadd.f32 %v3992_v0, %v983_v12  ;;  %v1038_v12 = vrot.slane %v3997_v34, 7 }
 0x2df   :  { %v4054_v46 = vmax.f32 %v984_v20, 0.0 }
 0x2e1   :  { %v1102_v50 = vrot.slane %v4054_v46, 1  ;;  %v1110_v53 = vrot.slane %v4054_v46, 3 }
 0x2e4   :  { %v3987_v55 = vpop.f32.mrf.mxu2 }
 0x2ec   :  { %v3994_v54 = vpop.f32.mrf.mxu2 }
 0x2f4   :  { %v990_v10 = vpop.f32.mrf.mxu2 }
 0x2f5   :  { %v991_v56 = vadd.f32 %v3992_v0, %v990_v10 }
 0x2f7   :  { %v4001_v23 = vmax.f32 %v991_v56, 0.0 }
 0x2f9   :  { %v1249_v3 = vrot.slane %v4001_v23, 3  ;;  %v1245_v62 = vrot.slane %v4001_v23, 2  ;;  %v1241_v1 = vrot.slane %v4001_v23, 1  ;;  %v1261_v7 = vrot.slane %v4001_v23, 6 }
 0x2fa   :  { %v1257_v8 = vrot.slane %v4001_v23, 5  ;;  %v1253_v21 = vrot.slane %v4001_v23, 4  ;;  %v1265_v33 = vrot.slane %v4001_v23, 7 }
 0x2fb   :  { %v3257_v52 = vpack.i.bf16 %v1022_v59, %v1249_v3  ;;  %v3252_v2 = vpack.i.bf16 %v1018_v60, %v1245_v62  ;;  %v3247_v4 = vpack.i.bf16 %v1014_v63, %v1241_v1  ;;  %v3272_v47 = vpack.i.bf16 %v1034_v9, %v1261_v7 }
 0x2fc   :  { %v993_v6 = vpop.f32.mrf.mxu2  ;;  %v3267_v61 = vpack.i.bf16 %v1030_v26, %v1257_v8  ;;  %v3262_v36 = vpack.i.bf16 %v1026_v11, %v1253_v21  ;;  %v3277_v57 = vpack.i.bf16 %v1038_v12, %v1265_v33  ;;  %v986_v63 = vadd.f32 %v3992_v0, %v3987_v55 }
 0x2fd   :  { %v994_v15 = vadd.f32 %v3992_v0, %v993_v6  ;;  %3258 = vrot.lane.b32.xlu2 %v3257_v52, %s3462_s2  ;;  %3253 = vrot.lane.b32.xlu1 %v3252_v2, %s3461_s20  ;;  %v1114_v1 = vrot.slane %v4054_v46, 4  ;;  %v1122_v52 = vrot.slane %v4054_v46, 6  ;;  %v1106_v2 = vrot.slane %v4054_v46, 2 }
 0x2fe   :  { %3248 = vrot.lane.b32.xlu0 %v3247_v4, %s3460_s0  ;;  %v1126_v11 = vrot.slane %v4054_v46, 7 }
 0x2ff   :  { %v4024_v16 = vmax.f32 %v994_v15, 0.0  ;;  %v1006_v15 = vmax.f32 %v986_v63, 0.0 }
 0x301   :  { %v3387_v24 = vpack.i.bf16 %v4009_v41, %v4024_v16  ;;  %v1273_v25 = vrot.slane %v4024_v16, 1  ;;  %v1285_v28 = vrot.slane %v4024_v16, 4  ;;  %v1281_v29 = vrot.slane %v4024_v16, 3  ;;  %v3029_v41 = vld [vmem:[%s5027_s3 + $0x44] sm:$0xf0] }
 0x302   :  { %v1277_v31 = vrot.slane %v4024_v16, 2  ;;  %v1293_v30 = vrot.slane %v4024_v16, 6  ;;  %v1289_v5 = vrot.slane %v4024_v16, 5  ;;  %v1297_v32 = vrot.slane %v4024_v16, 7 }
 0x303   :  { %v4040_v58 = vpack.i.bf16 %v1046_v13, %v1273_v25  ;;  %v4042_v37 = vpack.i.bf16 %v1058_v17, %v1285_v28  ;;  %v4044_v38 = vpack.i.bf16 %v1054_v48, %v1281_v29  ;;  %v1134_v13 = vrot.slane %v1006_v15, 1 }
 0x304   :  { %v995_v39 = vpop.f32.mrf.mxu2  ;;  %v4046_v42 = vpack.i.bf16 %v1050_v35, %v1277_v31  ;;  %v4048_v43 = vpack.i.bf16 %v1066_v19, %v1293_v30  ;;  %v4050_v44 = vpack.i.bf16 %v1062_v27, %v1289_v5  ;;  %v4052_v45 = vpack.i.bf16 %v1070_v22, %v1297_v32 }
 0x305   :  { %v996_v49 = vadd.f32 %v3992_v0, %v995_v39  ;;  %3273 = vrot.lane.b32.xlu2 %v3272_v47, %s3463_s19  ;;  %3268 = vrot.lane.b32.xlu1 %v3267_v61, %s3464_s21  ;;  %v1118_v17 = vrot.slane %v4054_v46, 5  ;;  %v1138_v20 = vrot.slane %v1006_v15, 2  ;;  %v1146_v47 = vrot.slane %v1006_v15, 4 }
 0x306   :  { %3263 = vrot.lane.b32.xlu0 %v3262_v36, %s3465_s22  ;;  %v989_v32 = vadd.f32 %v3992_v0, %v3994_v54  ;;  %v1150_v36 = vrot.slane %v1006_v15, 5  ;;  %v1154_v39 = vrot.slane %v1006_v15, 6 }
 0x307   :  { %v4060_v14 = vmax.f32 %v996_v49, 0.0  ;;  %v1142_v49 = vrot.slane %v1006_v15, 3 }
 0x309   :  { %v1317_v51 = vrot.slane %v4060_v14, 1  ;;  %v1325_v18 = vrot.slane %v4060_v14, 3  ;;  %v1329_v60 = vrot.slane %v4060_v14, 4  ;;  %v1337_v3 = vrot.slane %v4060_v14, 6 }
 0x30a   :  { %v1321_v62 = vrot.slane %v4060_v14, 2  ;;  %v1341_v55 = vrot.slane %v4060_v14, 7  ;;  %v1333_v26 = vrot.slane %v4060_v14, 5 }
 0x30b   :  { %v3282_v40 = vpack.i.bf16 %v1102_v50, %v1317_v51  ;;  %v3292_v10 = vpack.i.bf16 %v1110_v53, %v1325_v18  ;;  %v3297_v6 = vpack.i.bf16 %v1114_v1, %v1329_v60  ;;  %v3307_v7 = vpack.i.bf16 %v1122_v52, %v1337_v3 }
 0x30c   :  { %v998_v56 = vpop.f32.mrf.mxu2  ;;  %v3287_v8 = vpack.i.bf16 %v1106_v2, %v1321_v62  ;;  %v3312_v48 = vpack.i.bf16 %v1126_v11, %v1341_v55  ;;  %v3302_v21 = vpack.i.bf16 %v1118_v17, %v1333_v26  ;;  %v4107_v18 = vmax.f32 %v989_v32, 0.0  ;;  %v2593_v55 = vld [vmem:[%s5027_s3 + $0x70] sm:$0xf]  ;;  %v2585_v26 = vld [vmem:[%s5027_s3 + $0x60] sm:$0xf] }
 0x30d   :  { %3283 = vrot.lane.b32.xlu2 %v3282_v40, %s3460_s0  ;;  %3293 = vrot.lane.b32.xlu1 %v3292_v10, %s3462_s2  ;;  %v999_v59 = vadd.f32 %v3992_v0, %v998_v56  ;;  %v1158_v56 = vrot.slane %v1006_v15, 7  ;;  %v3033_v17 = vld [vmem:[%s5027_s3 + $0x64] sm:$0xf0] }
 0x30e   :  { %3278 = vrot.lane.b32.xlu0 %v3277_v57, %s3466_s23  ;;  %v1182_v40 = vrot.slane %v4107_v18, 2  ;;  %v1186_v10 = vrot.slane %v4107_v18, 3  ;;  %v1190_v1 = vrot.slane %v4107_v18, 4  ;;  %v1198_v52 = vrot.slane %v4107_v18, 6 }
 0x30f   :  { %v4080_v4 = vmax.f32 %v999_v59, 0.0  ;;  %v1178_v2 = vrot.slane %v4107_v18, 1  ;;  %v1202_v11 = vrot.slane %v4107_v18, 7 }
 0x311   :  { %v1349_v9 = vrot.slane %v4080_v4, 1  ;;  %v1353_v19 = vrot.slane %v4080_v4, 2  ;;  %v1361_v27 = vrot.slane %v4080_v4, 4  ;;  %v3317_v28 = vpack.i.bf16 %v1006_v15, %v4080_v4 }
 0x312   :  { %v1365_v31 = vrot.slane %v4080_v4, 5  ;;  %v1369_v30 = vrot.slane %v4080_v4, 6  ;;  %v1357_v5 = vrot.slane %v4080_v4, 3  ;;  %v1373_v12 = vrot.slane %v4080_v4, 7 }
 0x313   :  { %v3322_v35 = vpack.i.bf16 %v1134_v13, %v1349_v9  ;;  %v3327_v61 = vpack.i.bf16 %v1138_v20, %v1353_v19  ;;  %v3337_v22 = vpack.i.bf16 %v1146_v47, %v1361_v27  ;;  %v3035_v9 = vld [vmem:[%s5027_s3 + $0x74] sm:$0xf0]  ;;  %v2577_v27 = vld [vmem:[%s5027_s3 + $0x50] sm:$0xf] }
 0x314   :  { %v1000_v25 = vpop.f32.mrf.mxu2  ;;  %v3342_v50 = vpack.i.bf16 %v1150_v36, %v1365_v31  ;;  %v3347_v51 = vpack.i.bf16 %v1154_v39, %v1369_v30  ;;  %v3332_v53 = vpack.i.bf16 %v1142_v49, %v1357_v5  ;;  %v3352_v60 = vpack.i.bf16 %v1158_v56, %v1373_v12  ;;  %v3031_v20 = vld [vmem:[%s5027_s3 + $0x54] sm:$0xf0] }
 0x315   :  { %3298 = vrot.lane.b32.xlu2 %v3297_v6, %s3465_s22  ;;  %3308 = vrot.lane.b32.xlu1 %v3307_v7, %s3463_s19  ;;  %v1001_v29 = vadd.f32 %v3992_v0, %v1000_v25  ;;  %v2594_v13 = vor.u32 %v3035_v9, %v2593_v55  ;;  %v2578_v47 = vor.u32 %v3031_v20, %v2577_v27  ;;  %v3023_v31 = vld [vmem:[%s5027_s3 + $0x14] sm:$0xf0]  ;;  %v2657_v20 = vld [vmem:[%s5027_s3 + $0xf0] sm:$0xf] }
 0x316   :  { %3288 = vrot.lane.b32.xlu0 %v3287_v8, %s3461_s20 }
 0x317   :  { %v4105_v33 = vmax.f32 %v1001_v29, 0.0  ;;  %2153 = vmatpush.bf16.msrb.mxu3 %v2594_v13  ;;  %v2545_v29 = vld [vmem:[%s5027_s3 + $0x10] sm:$0xf] }
 0x318   :  { %v2546_v30 = vor.u32 %v3023_v31, %v2545_v29 }
 0x319   :  { %v1397_v0 = vrot.slane %v4105_v33, 2  ;;  %v1401_v54 = vrot.slane %v4105_v33, 3  ;;  %v1405_v3 = vrot.slane %v4105_v33, 4  ;;  %v1413_v62 = vrot.slane %v4105_v33, 6 }
 0x31a   :  { %v1393_v63 = vrot.slane %v4105_v33, 1  ;;  %v1417_v8 = vrot.slane %v4105_v33, 7  ;;  %v1409_v15 = vrot.slane %v4105_v33, 5 }
 0x31b   :  { %v3362_v57 = vpack.i.bf16 %v1182_v40, %v1397_v0  ;;  %v3367_v59 = vpack.i.bf16 %v1186_v10, %v1401_v54  ;;  %v3372_v4 = vpack.i.bf16 %v1190_v1, %v1405_v3  ;;  %v3382_v6 = vpack.i.bf16 %v1198_v52, %v1413_v62 }
 0x31c   :  { %v3357_v7 = vpack.i.bf16 %v1178_v2, %v1393_v63 }
 0x31d   :  { %3313 = vrot.lane.b32.xlu2 %v3312_v48, %s3466_s23  ;;  %3323 = vrot.lane.b32.xlu1 %v3322_v35, %s3467_s24  ;;  %v1194_v48 = vrot.slane %v4107_v18, 5  ;;  %v3392_v35 = vpack.i.bf16 %v1202_v11, %v1417_v8 }
 0x31e   :  { %3303 = vrot.lane.b32.xlu0 %v3302_v21, %s3464_s21  ;;  %v2586_v21 = vor.u32 %v3033_v17, %v2585_v26 }
 0x31f   :  { %v3377_v19 = vpack.i.bf16 %v1194_v48, %v1409_v15 }
 0x320   :  { %2154 = vmatpush.bf16.msrb.mxu3 %v2586_v21 }
 0x324   :  { %2155 = vmatpush.bf16.msrb.mxu3 %v2578_v47  ;;  %v3051_v47 = vld [vmem:[%s5027_s3 + $0xf4] sm:$0xf0] }
 0x325   :  { %3328 = vrot.lane.b32.xlu2 %v3327_v61, %s3468_s25  ;;  %3338 = vrot.lane.b32.xlu1 %v3337_v22, %s3469_s26  ;;  %v2569_v61 = vld [vmem:[%s5027_s3 + $0x40] sm:$0xf]  ;;  %v3027_v22 = vld [vmem:[%s5027_s3 + $0x34] sm:$0xf0] }
 0x326   :  { %3318 = vrot.lane.b32.xlu0 %v3317_v28, %s3470_s27  ;;  %v2570_v16 = vor.u32 %v3029_v41, %v2569_v61 }
 0x328   :  { %2156 = vmatpush.bf16.msrb.mxu3 %v2570_v16  ;;  %v2658_v16 = vor.u32 %v3051_v47, %v2657_v20 }
 0x32a   :  { %2166 = vmatpush.bf16.msrb.mxu0 %v2658_v16 }
 0x32d   :  { %3343 = vrot.lane.b32.xlu2 %v3342_v50, %s3471_s28  ;;  %3348 = vrot.lane.b32.xlu1 %v3347_v51, %s3472_s29 }
 0x32e   :  { %3333 = vrot.lane.b32.xlu0 %v3332_v53, %s3473_s30 }
 0x335   :  { %3363 = vrot.lane.b32.xlu2 %v3362_v57, %s3461_s20  ;;  %3368 = vrot.lane.b32.xlu1 %v3367_v59, %s3462_s2 }
 0x336   :  { %3353 = vrot.lane.b32.xlu0 %v3352_v60, %s3474_s6 }
 0x33d   :  { %3373 = vrot.lane.b32.xlu2 %v3372_v4, %s3465_s22  ;;  %3383 = vrot.lane.b32.xlu1 %v3382_v6, %s3463_s19 }
 0x33e   :  { %3358 = vrot.lane.b32.xlu0 %v3357_v7, %s3460_s0 }
 0x345   :  { %3393 = vrot.lane.b32.xlu2 %v3392_v35, %s3466_s23  ;;  %3388 = vrot.lane.b32.xlu1 %v3387_v24, %s3470_s27  ;;  %v2561_v24 = vld [vmem:[%s5027_s3 + $0x30] sm:$0xf]  ;;  %s3475_s27 = smov 96  }
 0x346   :  { %3378 = vrot.lane.b32.xlu0 %v3377_v19, %s3464_s21  ;;  %v2562_v25 = vor.u32 %v3027_v22, %v2561_v24  ;;  %v2649_v24 = vld [vmem:[%s5027_s3 + $0xe0] sm:$0xf]  ;;  %v3049_v22 = vld [vmem:[%s5027_s3 + $0xe4] sm:$0xf0] }
 0x348   :  { %2157 = vmatpush.bf16.msrb.mxu3 %v2562_v25 }
 0x34d   :  { %3398 = vrot.lane.b32.xlu2 %v4040_v58, %s3467_s24  ;;  %3408 = vrot.lane.b32.xlu1 %v4042_v37, %s3469_s26  ;;  %v2553_v58 = vld [vmem:[%s5027_s3 + $0x20] sm:$0xf]  ;;  %v3025_v37 = vld [vmem:[%s5027_s3 + $0x24] sm:$0xf0] }
 0x34e   :  { %3403 = vrot.lane.b32.xlu0 %v4044_v38, %s3473_s30  ;;  %v2554_v38 = vor.u32 %v3025_v37, %v2553_v58 }
 0x350   :  { %2158 = vmatpush.bf16.msrb.mxu3 %v2554_v38  ;;  %v2650_v38 = vor.u32 %v3049_v22, %v2649_v24 }
 0x352   :  { %2167 = vmatpush.bf16.msrb.mxu0 %v2650_v38 }
 0x354   :  { %2159 = vmatpush.bf16.msrb.mxu3 %v2546_v30 }
 0x355   :  { %3413 = vrot.lane.b32.xlu2 %v4046_v42, %s3468_s25  ;;  %3423 = vrot.lane.b32.xlu1 %v4048_v43, %s3472_s29  ;;  %v2537_v42 = vld [vmem:[%s5027_s3] sm:$0xf]  ;;  %v3021_v43 = vld [vmem:[%s5027_s3 + $0x4] sm:$0xf0] }
 0x356   :  { %3418 = vrot.lane.b32.xlu0 %v4050_v44, %s3471_s28  ;;  %v2538_v44 = vor.u32 %v3021_v43, %v2537_v42 }
 0x357   :  { %v3259_v28 = vpop.permute.xlu2 %3258 }
 0x358   :  { %2160 = vmatpush.bf16.msrb.mxu3 %v2538_v44  ;;  %v3261_v40 = vunpack.i.h.bf16 %v3259_v28 }
 0x35d   :  { %3428 = vrot.lane.b32.xlu2 %v4052_v45, %s3474_s6  ;;  %v3260_v45 = vunpack.i.l.bf16 %v3259_v28 }
 0x35f   :  { %v3274_v5 = vpop.permute.xlu2 %3273 }
 0x360   :  { %v3276_v60 = vunpack.i.h.bf16 %v3274_v5  ;;  %v3275_v3 = vunpack.i.l.bf16 %v3274_v5 }
 0x367   :  { %v3284_v32 = vpop.permute.xlu2 %3283 }
 0x368   :  { %v3286_v35 = vunpack.i.h.bf16 %v3284_v32  ;;  %v3285_v21 = vunpack.i.l.bf16 %v3284_v32 }
 0x36a   :  { %v1162_v58 = vsel %vm630_vm7, %v4054_v46, %v3286_v35  ;;  %v1377_v37 = vsel %vm630_vm7, %v4060_v14, %v3285_v21  ;;  %v2641_v14 = vld [vmem:[%s5027_s3 + $0xd0] sm:$0xf] }
 0x36f   :  { %v4201_v36 = vpop.permute.xlu2 %3298  ;;  %v3254_v39 = vpop.permute.xlu1 %3253 }
 0x370   :  { %v3249_v49 = vpop.permute.xlu0 %3248  ;;  %v3256_v53 = vunpack.i.h.bf16 %v3254_v39  ;;  %v3255_v0 = vunpack.i.l.bf16 %v3254_v39  ;;  %v3301_v5 = vunpack.i.h.bf16 %v4201_v36  ;;  %v3300_v46 = vunpack.i.l.bf16 %v4201_v36  ;;  %v3047_v39 = vld [vmem:[%s5027_s3 + $0xd4] sm:$0xf0] }
 0x371   :  { %v3251_v50 = vunpack.i.h.bf16 %v3249_v49  ;;  %v3250_v51 = vunpack.i.l.bf16 %v3249_v49 }
 0x373   :  { %v1074_v54 = vsel %vm630_vm7, %v3997_v34, %v3251_v50  ;;  %v1301_v12 = vsel %vm630_vm7, %v4001_v23, %v3250_v51  ;;  %v2642_v51 = vor.u32 %v3047_v39, %v2641_v14  ;;  %v2601_v14 = vld [vmem:[%s5027_s3 + $0x80] sm:$0xf]  ;;  %v3037_v39 = vld [vmem:[%s5027_s3 + $0x84] sm:$0xf0] }
 0x374   :  { %v1075_v10 = vsel %vm641_vm8, %v1074_v54, %v3256_v53  ;;  %v1302_v56 = vsel %vm641_vm8, %v1301_v12, %v3255_v0 }
 0x375   :  { %v1076_v4 = vsel %vm685_vm9, %v1075_v10, %v3261_v40  ;;  %v1303_v6 = vsel %vm685_vm9, %v1302_v56, %v3260_v45  ;;  %2168 = vmatpush.bf16.msrb.mxu0 %v2642_v51  ;;  %v2633_v45 = vld [vmem:[%s5027_s3 + $0xc0] sm:$0xf]  ;;  %v3045_v10 = vld [vmem:[%s5027_s3 + $0xc4] sm:$0xf0]  ;;  %v2602_v51 = vor.u32 %v3037_v39, %v2601_v14 }
 0x376   :  { %v2634_v56 = vor.u32 %v3045_v10, %v2633_v45  ;;  %v2825_v14 = vld [vmem:[%s5027_s3 + $0x240] sm:$0xf] }
 0x377   :  { %v4209_v57 = vpop.permute.xlu2 %3313  ;;  %v3269_v59 = vpop.permute.xlu1 %3268 }
 0x378   :  { %v3271_v62 = vunpack.i.h.bf16 %v3269_v59  ;;  %v3270_v63 = vunpack.i.l.bf16 %v3269_v59  ;;  %v3264_v1 = vpop.permute.xlu0 %3263 }
 0x379   :  { %v3266_v34 = vunpack.i.h.bf16 %v3264_v1  ;;  %v3265_v52 = vunpack.i.l.bf16 %v3264_v1  ;;  %2169 = vmatpush.bf16.msrb.mxu0 %v2634_v56 }
 0x37a   :  { %v4212_v23 = vsel %vm1081_vm11, %v3271_v62, %v3276_v60  ;;  %v4215_v2 = vsel %vm1081_vm11, %v3270_v63, %v3275_v3 }
 0x37b   :  { %v1078_v7 = vsel %vm1077_vm12, %v1076_v4, %v3266_v34  ;;  %v1304_v8 = vsel %vm1077_vm12, %v1303_v6, %v3265_v52  ;;  %v2625_v4 = vld [vmem:[%s5027_s3 + $0xb0] sm:$0xf]  ;;  %v3043_v6 = vld [vmem:[%s5027_s3 + $0xb4] sm:$0xf0] }
 0x37c   :  { %v1305_v15 = vsel %vm1079_vm13, %v1304_v8, %v3270_v63  ;;  %v1080_v9 = vsel %vm1079_vm13, %v1078_v7, %v3271_v62  ;;  %v3316_v62 = vunpack.i.h.bf16 %v4209_v57  ;;  %v3315_v63 = vunpack.i.l.bf16 %v4209_v57 }
 0x37d   :  { %v1455_v55 = vrot.slane %v1305_v15, 7  ;;  %v2626_v15 = vor.u32 %v3043_v6, %v2625_v4  ;;  %v3065_v6 = vld [vmem:[%s5027_s3 + $0x164] sm:$0xf0] }
 0x37f   :  { %v3294_v26 = vpop.permute.xlu1 %3293  ;;  %v1469_v11 = vsel %vm701_vm4, %v1080_v9, %v1455_v55  ;;  %v4224_v13 = vpop.permute.xlu2 %3328  ;;  %2170 = vmatpush.bf16.msrb.mxu0 %v2626_v15  ;;  %v2617_v9 = vld [vmem:[%s5027_s3 + $0xa0] sm:$0xf] }
 0x380   :  { %v4226_v17 = vpop.permute.xlu0 %3278  ;;  %v4228_v48 = vpack.c.bf16 %v1469_v11, %v1469_v11  ;;  %v3296_v31 = vunpack.i.h.bf16 %v3294_v26  ;;  %v3295_v30 = vunpack.i.l.bf16 %v3294_v26  ;;  %v3041_v26 = vld [vmem:[%s5027_s3 + $0xa4] sm:$0xf0]  ;;  %v3331_v16 = vunpack.i.h.bf16 %v4224_v13 }
 0x381   :  { %v2618_v21 = vor.u32 %v3041_v26, %v2617_v9  ;;  %v3330_v24 = vunpack.i.l.bf16 %v4224_v13  ;;  %v3281_v15 = vunpack.i.h.bf16 %v4226_v17 }
 0x382   :  { %2161 = vmatmul.bf16.vlgmr.msrb.gmra.mxu3 %v4228_v48 }
 0x383   :  { %2171 = vmatpush.bf16.msrb.mxu0 %v2618_v21  ;;  %v3097_v21 = vld [vmem:[%s5027_s3 + $0x264] sm:$0xf0] }
 0x387   :  { %v3309_v19 = vpop.permute.xlu1 %3308  ;;  %v4243_v25 = vpop.permute.xlu2 %3343 }
 0x388   :  { %v3289_v27 = vpop.permute.xlu0 %3288  ;;  %v3311_v59 = vunpack.i.h.bf16 %v3309_v19  ;;  %v3310_v60 = vunpack.i.l.bf16 %v3309_v19 }
 0x389   :  { %v3291_v61 = vunpack.i.h.bf16 %v3289_v27  ;;  %v3290_v41 = vunpack.i.l.bf16 %v3289_v27 }
 0x38b   :  { %v1163_v28 = vsel %vm641_vm8, %v1162_v58, %v3291_v61  ;;  %v1378_v29 = vsel %vm641_vm8, %v1377_v37, %v3290_v41  ;;  %v2609_v58 = vld [vmem:[%s5027_s3 + $0x90] sm:$0xf]  ;;  %v3039_v37 = vld [vmem:[%s5027_s3 + $0x94] sm:$0xf0] }
 0x38c   :  { %v1164_v42 = vsel %vm685_vm9, %v1163_v28, %v3296_v31  ;;  %v1379_v43 = vsel %vm685_vm9, %v1378_v29, %v3295_v30  ;;  %v2610_v29 = vor.u32 %v3039_v37, %v2609_v58  ;;  %v2723_v58 = vld [vmem:[%s5027_s3 + $0x178] sm:$0xf0]  ;;  %v4380_v37 = vsel %vm1083_vm15, %v4212_v23, %v3281_v15  ;;  %v2769_v15 = vld [vmem:[%s5027_s3 + $0x1d0] sm:$0xf] }
 0x38d   :  { %v1165_v53 = vsel %vm1077_vm12, %v1164_v42, %v3301_v5  ;;  %v1380_v0 = vsel %vm1077_vm12, %v1379_v43, %v3300_v46 }
 0x38e   :  { %2172 = vmatpush.bf16.msrb.mxu0 %v2610_v29 }
 0x38f   :  { %v3324_v44 = vpop.permute.xlu1 %3323  ;;  %v4265_v12 = vpop.permute.xlu2 %3363 }
 0x390   :  { %v3304_v32 = vpop.permute.xlu0 %3303  ;;  %v3326_v19 = vunpack.i.h.bf16 %v3324_v44  ;;  %v3325_v27 = vunpack.i.l.bf16 %v3324_v44 }
 0x391   :  { %v3306_v49 = vunpack.i.h.bf16 %v3304_v32  ;;  %v3305_v50 = vunpack.i.l.bf16 %v3304_v32 }
 0x392   :  { %2173 = vmatpush.bf16.msrb.mxu0 %v2602_v51 }
 0x393   :  { %v1166_v54 = vsel %vm1079_vm13, %v1165_v53, %v3306_v49  ;;  %v1381_v36 = vsel %vm1079_vm13, %v1380_v0, %v3305_v50  ;;  %v1167_v1 = vsel %vm1081_vm11, %v3306_v49, %v3311_v59  ;;  %v1382_v34 = vsel %vm1081_vm11, %v3305_v50, %v3310_v60 }
 0x394   :  { %v3432_v40 = vpack.i.bf16 %v1166_v54, %v1381_v36  ;;  %v1168_v57 = vsel %vm1083_vm15, %v1167_v1, %v3316_v62  ;;  %v1383_v55 = vsel %vm1083_vm15, %v1382_v34, %v3315_v63  ;;  %v3346_v49 = vunpack.i.h.bf16 %v4243_v25  ;;  %v2721_v1 = vld [vmem:[%s5027_s3 + $0x170] sm:$0xf]  ;;  %v3067_v34 = vld [vmem:[%s5027_s3 + $0x174] sm:$0xf0] }
 0x395   :  { %v3345_v50 = vunpack.i.l.bf16 %v4243_v25  ;;  %v2722_v4 = vor.u32 %v3067_v34, %v2721_v1  ;;  %v2817_v34 = vld [vmem:[%s5027_s3 + $0x230] sm:$0xf] }
 0x396   :  { %3433 = vrot.lane.b32.xlu0 %v3432_v40, %s3475_s27 }
 0x397   :  { %v3339_v3 = vpop.permute.xlu1 %3338  ;;  %v4294_v20 = vpop.permute.xlu2 %3373  ;;  %2179 = vmatpush.bf16.msrb.mxu1 %v2722_v4 }
 0x398   :  { %v3319_v52 = vpop.permute.xlu0 %3318  ;;  %v3341_v31 = vunpack.i.h.bf16 %v3339_v3  ;;  %v3340_v30 = vunpack.i.l.bf16 %v3339_v3 }
 0x399   :  { %v3321_v7 = vunpack.i.h.bf16 %v3319_v52  ;;  %v3320_v8 = vunpack.i.l.bf16 %v3319_v52  ;;  %v2713_v52 = vld [vmem:[%s5027_s3 + $0x160] sm:$0xf] }
 0x39a   :  { %v2714_v26 = vor.u32 %v3065_v6, %v2713_v52 }
 0x39b   :  { %v1169_v11 = vsel %vm1085_vm14, %v1168_v57, %v3321_v7  ;;  %v1384_v35 = vsel %vm1085_vm14, %v1383_v55, %v3320_v8  ;;  %v2849_v7 = vld [vmem:[%s5027_s3 + $0x270] sm:$0xf]  ;;  %v3099_v8 = vld [vmem:[%s5027_s3 + $0x274] sm:$0xf0]  ;;  %v2841_v55 = vld [vmem:[%s5027_s3 + $0x260] sm:$0xf] }
 0x39c   :  { %v1170_v47 = vsel %vm1087_vm1, %v1169_v11, %v3326_v19  ;;  %v1385_v61 = vsel %vm1087_vm1, %v1384_v35, %v3325_v27  ;;  %v2850_v57 = vor.u32 %v3099_v8, %v2849_v7  ;;  %v2705_v11 = vld [vmem:[%s5027_s3 + $0x150] sm:$0xf]  ;;  %v3063_v35 = vld [vmem:[%s5027_s3 + $0x154] sm:$0xf0]  ;;  %2180 = vmatpush.bf16.msrb.mxu1 %v2714_v26 }
 0x39d   :  { %v1171_v42 = vsel %vm1089_vm2, %v1170_v47, %v3331_v16  ;;  %v1386_v13 = vsel %vm1089_vm2, %v1385_v61, %v3330_v24  ;;  %v2833_v27 = vld [vmem:[%s5027_s3 + $0x250] sm:$0xf]  ;;  %v3095_v47 = vld [vmem:[%s5027_s3 + $0x254] sm:$0xf0]  ;;  %v3066_v61 = vld [vmem:[%s5027_s3 + $0x174] sm:$0xf] }
 0x39e   :  { %2205 = vmatpush.bf16.msra.mxu0 %v2850_v57  ;;  %v3091_v8 = vld [vmem:[%s5027_s3 + $0x234] sm:$0xf0] }
 0x39f   :  { %v3349_v41 = vpop.permute.xlu1 %3348  ;;  %v4325_v36 = vpop.permute.xlu2 %3393  ;;  %v3079_v57 = vld [vmem:[%s5027_s3 + $0x1d4] sm:$0xf0] }
 0x3a0   :  { %v3334_v22 = vpop.permute.xlu0 %3333  ;;  %v3351_v40 = vunpack.i.h.bf16 %v3349_v41  ;;  %v3350_v45 = vunpack.i.l.bf16 %v3349_v41  ;;  %v3280_v41 = vunpack.i.l.bf16 %v4226_v17  ;;  %v4389_v17 = vld [vmem:[%s5027_s3 + $0x140] sm:$0xf] }
 0x3a1   :  { %v3336_v38 = vunpack.i.h.bf16 %v3334_v22  ;;  %v3335_v28 = vunpack.i.l.bf16 %v3334_v22  ;;  %v2842_v22 = vor.u32 %v3097_v21, %v2841_v55 }
 0x3a3   :  { %v1172_v43 = vsel %vm1091_vm3, %v1171_v42, %v3336_v38  ;;  %v1387_v44 = vsel %vm1091_vm3, %v1386_v13, %v3335_v28  ;;  %v1173_v5 = vsel %vm1093_vm5, %v3336_v38, %v3341_v31  ;;  %v1388_v46 = vsel %vm1093_vm5, %v3335_v28, %v3340_v30  ;;  %v2785_v30 = vld [vmem:[%s5027_s3 + $0x1f0] sm:$0xf]  ;;  %2206 = vmatpush.bf16.msra.mxu0 %v2842_v22 }
 0x3a4   :  { %v3437_v32 = vpack.i.bf16 %v1172_v43, %v1387_v44  ;;  %v1174_v53 = vsel %vm1095_vm6, %v1173_v5, %v3346_v49  ;;  %v1389_v0 = vsel %vm1095_vm6, %v1388_v46, %v3345_v50  ;;  %v3366_v38 = vunpack.i.h.bf16 %v4265_v12  ;;  %v3083_v43 = vld [vmem:[%s5027_s3 + $0x1f4] sm:$0xf0]  ;;  %v3064_v44 = vld [vmem:[%s5027_s3 + $0x164] sm:$0xf]  ;;  %v2715_v5 = vld [vmem:[%s5027_s3 + $0x168] sm:$0xf0] }
 0x3a5   :  { %v1175_v25 = vsel %vm1097_vm10, %v1174_v53, %v3351_v40  ;;  %v1390_v60 = vsel %vm1097_vm10, %v1389_v0, %v3350_v45  ;;  %v3365_v28 = vunpack.i.l.bf16 %v4265_v12  ;;  %v2726_v31 = vor.u32 %v3066_v61, %v2723_v58  ;;  %v3093_v53 = vld [vmem:[%s5027_s3 + $0x244] sm:$0xf0]  ;;  %v2777_v40 = vld [vmem:[%s5027_s3 + $0x1e0] sm:$0xf]  ;;  %v2699_v61 = vld [vmem:[%s5027_s3 + $0x148] sm:$0xf0] }
 0x3a6   :  { %3438 = vrot.lane.b32.xlu1 %v3437_v32, %s3475_s27  ;;  %v2706_v12 = vor.u32 %v3063_v35, %v2705_v11  ;;  %v2834_v13 = vor.u32 %v3095_v47, %v2833_v27  ;;  %v4415_v32 = vld [vmem:[%s5027_s3 + $0x130] sm:$0xf]  ;;  %v2786_v39 = vor.u32 %v3083_v43, %v2785_v30  ;;  %v1307_v49 = vsel %vm1083_vm15, %v4215_v2, %v3280_v41  ;;  %v3081_v45 = vld [vmem:[%s5027_s3 + $0x1e4] sm:$0xf0]  ;;  %v3060_v47 = vld [vmem:[%s5027_s3 + $0x144] sm:$0xf] }
 0x3a7   :  { %v4323_v54 = vpop.permute.xlu1 %3368  ;;  %v4384_v29 = vpop.permute.xlu2 %3398  ;;  %2270 = vmatpush.bf16.msra.mxu2 %v2726_v31  ;;  %v2718_v0 = vor.u32 %v3064_v44, %v2715_v5  ;;  %v3375_v2 = vunpack.i.l.bf16 %v4294_v20  ;;  %v2770_v27 = vor.u32 %v3079_v57, %v2769_v15  ;;  %v2818_v22 = vor.u32 %v3091_v8, %v2817_v34  ;;  %v2761_v58 = vld [vmem:[%s5027_s3 + $0x1c0] sm:$0xf]  ;;  %v3057_v44 = vld [vmem:[%s5027_s3 + $0x124] sm:$0xf0] }
 0x3a8   :  { %v3354_v10 = vpop.permute.xlu0 %3353  ;;  %v3371_v50 = vunpack.i.h.bf16 %v4323_v54  ;;  %v3370_v51 = vunpack.i.l.bf16 %v4323_v54  ;;  %v4439_v54 = vld [vmem:[%s5027_s3 + $0x134] sm:$0xf0]  ;;  %2192 = vmatpush.bf16.msra.mxu3 %v2786_v39  ;;  %2181 = vmatpush.bf16.msrb.mxu1 %v2706_v12  ;;  %v3400_v12 = vunpack.i.l.bf16 %v4384_v29  ;;  %v2809_v5 = vld [vmem:[%s5027_s3 + $0x220] sm:$0xf]  ;;  %v2691_v39 = vld [vmem:[%s5027_s3 + $0x138] sm:$0xf0] }
 0x3a9   :  { %v3356_v56 = vunpack.i.h.bf16 %v3354_v10  ;;  %v3355_v59 = vunpack.i.l.bf16 %v3354_v10  ;;  %v3376_v10 = vunpack.i.h.bf16 %v4294_v20  ;;  %2207 = vmatpush.bf16.msra.mxu0 %v2834_v13  ;;  %v3053_v15 = vld [vmem:[%s5027_s3 + $0x104] sm:$0xf0]  ;;  %v2793_v57 = vld [vmem:[%s5027_s3 + $0x200] sm:$0xf] }
 0x3ab   :  { %v1176_v3 = vsel %vm1099_vm0, %v1175_v25, %v3356_v56  ;;  %v1391_v62 = vsel %vm1099_vm0, %v1390_v60, %v3355_v59  ;;  %v3396_v56 = vunpack.i.h.bf16 %v4325_v36  ;;  %v2778_v59 = vor.u32 %v3081_v45, %v2777_v40  ;;  %v3062_v25 = vld [vmem:[%s5027_s3 + $0x154] sm:$0xf]  ;;  %v2707_v60 = vld [vmem:[%s5027_s3 + $0x158] sm:$0xf0]  ;;  %2271 = vmatpush.bf16.msra.mxu2 %v2718_v0 }
 0x3ac   :  { %v3442_v63 = vpack.i.bf16 %v1176_v3, %v1391_v62  ;;  %v3395_v3 = vunpack.i.l.bf16 %v4325_v36  ;;  %v2826_v36 = vor.u32 %v3093_v53, %v2825_v14  ;;  %v2710_v11 = vor.u32 %v3062_v25, %v2707_v60  ;;  %v3058_v14 = vld [vmem:[%s5027_s3 + $0x134] sm:$0xf]  ;;  %v2801_v25 = vld [vmem:[%s5027_s3 + $0x210] sm:$0xf]  ;;  %v3087_v60 = vld [vmem:[%s5027_s3 + $0x214] sm:$0xf0] }
 0x3ad   :  { %2193 = vmatpush.bf16.msra.mxu3 %v2778_v59  ;;  %v3055_v59 = vld [vmem:[%s5027_s3 + $0x114] sm:$0xf0] }
 0x3ae   :  { %3443 = vrot.lane.b32.xlu2 %v3442_v63, %s3475_s27  ;;  %2208 = vmatpush.bf16.msra.mxu0 %v2826_v36  ;;  %v2802_v36 = vor.u32 %v3087_v60, %v2801_v25  ;;  %v2889_v25 = vld [vmem:[%s5027_s3 + $0x2c0] sm:$0xf]  ;;  %v3109_v60 = vld [vmem:[%s5027_s3 + $0x2c4] sm:$0xf0] }
 0x3af   :  { %v4354_v9 = vpop.permute.xlu1 %3383  ;;  %2272 = vmatpush.bf16.msra.mxu2 %v2710_v11  ;;  %v3115_v11 = vld [vmem:[%s5027_s3 + $0x2f4] sm:$0xf0] }
 0x3b0   :  { %v3359_v19 = vpop.permute.xlu0 %3358  ;;  %v3386_v52 = vunpack.i.h.bf16 %v4354_v9  ;;  %v3385_v4 = vunpack.i.l.bf16 %v4354_v9  ;;  %v2690_v9 = vor.u32 %v4439_v54, %v4415_v32 }
 0x3b1   :  { %v3361_v16 = vunpack.i.h.bf16 %v3359_v19  ;;  %v3360_v24 = vunpack.i.l.bf16 %v3359_v19  ;;  %2194 = vmatpush.bf16.msra.mxu3 %v2770_v27 }
 0x3b2   :  { %2209 = vmatpush.bf16.msra.mxu0 %v2818_v22 }
 0x3b3   :  { %v1206_v23 = vsel %vm630_vm7, %v4107_v18, %v3361_v16  ;;  %v1421_v42 = vsel %vm630_vm7, %v4105_v33, %v3360_v24  ;;  %v3061_v33 = vld [vmem:[%s5027_s3 + $0x144] sm:$0xf0]  ;;  %vm5031_vm7 = vcmask 523264  }
 0x3b4   :  { %v1207_v18 = vsel %vm641_vm8, %v1206_v23, %v3366_v38  ;;  %v1422_v46 = vsel %vm641_vm8, %v1421_v42, %v3365_v28  ;;  %v2698_v1 = vor.u32 %v3061_v33, %v4389_v17  ;;  %v3077_v38 = vld [vmem:[%s5027_s3 + $0x1c4] sm:$0xf0]  ;;  %v3414_v28 = vpop.permute.xlu2 %3413  ;;  %v2681_v42 = vld [vmem:[%s5027_s3 + $0x120] sm:$0xf]  ;;  %vm5032_vm8 = vmmov %vm5031_vm7 }
 0x3b5   :  { %v1208_v62 = vsel %vm685_vm9, %v1207_v18, %v3371_v50  ;;  %v1423_v63 = vsel %vm685_vm9, %v1422_v46, %v3370_v51  ;;  %v3089_v18 = vld [vmem:[%s5027_s3 + $0x224] sm:$0xf0]  ;;  %v2702_v46 = vor.u32 %v3060_v47, %v2699_v61  ;;  %v2762_v32 = vor.u32 %v3077_v38, %v2761_v58  ;;  %v2905_v38 = vld [vmem:[%s5027_s3 + $0x2e0] sm:$0xf]  ;;  %vm5033_vm9 = vmmov %vm5031_vm7 }
 0x3b6   :  { %v1209_v21 = vsel %vm1077_vm12, %v1208_v62, %v3376_v10  ;;  %v1424_v19 = vsel %vm1077_vm12, %v1423_v63, %v3375_v2  ;;  %2182 = vmatpush.bf16.msrb.mxu1 %v2698_v1  ;;  %v3415_v50 = vunpack.i.l.bf16 %v3414_v28  ;;  %v2682_v45 = vor.u32 %v3057_v44, %v2681_v42  ;;  %v2673_v10 = vld [vmem:[%s5027_s3 + $0x110] sm:$0xf] }
 0x3b7   :  { %v3389_v20 = vpop.permute.xlu1 %3388  ;;  %v2810_v2 = vor.u32 %v3089_v18, %v2809_v5  ;;  %2273 = vmatpush.bf16.msra.mxu2 %v2702_v46  ;;  %2195 = vmatpush.bf16.msra.mxu3 %v2762_v32  ;;  %v2753_v5 = vld [vmem:[%s5027_s3 + $0x1b0] sm:$0xf]  ;;  %v3075_v18 = vld [vmem:[%s5027_s3 + $0x1b4] sm:$0xf0]  ;;  %v3034_v46 = vld [vmem:[%s5027_s3 + $0x74] sm:$0xf] }
 0x3b8   :  { %v3390_v6 = vunpack.i.l.bf16 %v3389_v20  ;;  %v3379_v7 = vpop.permute.xlu0 %3378  ;;  %v3391_v35 = vunpack.i.h.bf16 %v3389_v20  ;;  %v3416_v20 = vunpack.i.h.bf16 %v3414_v28  ;;  %v3113_v28 = vld [vmem:[%s5027_s3 + $0x2e4] sm:$0xf0]  ;;  %v2595_v32 = vld [vmem:[%s5027_s3 + $0x78] sm:$0xf0]  ;;  %vm2149_vm12 = vcmask 916480  }
 0x3b9   :  { %v3381_v55 = vunpack.i.h.bf16 %v3379_v7  ;;  %v3380_v26 = vunpack.i.l.bf16 %v3379_v7  ;;  %2210 = vmatpush.bf16.msra.mxu0 %v2810_v2  ;;  %v2665_v7 = vld [vmem:[%s5027_s3 + $0x100] sm:$0xf]  ;;  %v2587_v2 = vld [vmem:[%s5027_s3 + $0x68] sm:$0xf0] }
 0x3ba   :  { %v1308_v41 = vsel %vm1085_vm14, %v1307_v49, %v3390_v6  ;;  %v1086_v33 = vsel %vm1085_vm14, %v4380_v37, %v3391_v35  ;;  %v3401_v49 = vunpack.i.h.bf16 %v4384_v29  ;;  %2183 = vmatpush.bf16.msrb.mxu1 %v2690_v9  ;;  %v2674_v6 = vor.u32 %v3055_v59, %v2673_v10  ;;  %v2913_v9 = vld [vmem:[%s5027_s3 + $0x2f0] sm:$0xf] }
 0x3bb   :  { %v1211_v16 = vsel %vm1081_vm11, %v3381_v55, %v3386_v52  ;;  %v1426_v24 = vsel %vm1081_vm11, %v3380_v26, %v3385_v4  ;;  %v1210_v17 = vsel %vm1079_vm13, %v1209_v21, %v3381_v55  ;;  %v1425_v31 = vsel %vm1079_vm13, %v1424_v19, %v3380_v26  ;;  %v3085_v55 = vld [vmem:[%s5027_s3 + $0x204] sm:$0xf0]  ;;  %vm5034_vm11 = vmmov %vm5031_vm7 }
 0x3bc   :  { %v1212_v30 = vsel %vm1083_vm15, %v1211_v16, %v3396_v56  ;;  %v1427_v23 = vsel %vm1083_vm15, %v1426_v24, %v3395_v3  ;;  %v3447_v13 = vpack.i.bf16 %v1210_v17, %v1425_v31  ;;  %v1309_v51 = vsel %vm1087_vm1, %v1308_v41, %v3400_v12  ;;  %v3429_v19 = vpop.permute.xlu2 %3428 }
 0x3bd   :  { %v3452_v43 = vpack.i.bf16 %v1212_v30, %v1427_v23  ;;  %v1088_v29 = vsel %vm1087_vm1, %v1086_v33, %v3401_v49  ;;  %v2694_v3 = vor.u32 %v3058_v14, %v2691_v39  ;;  %v1310_v62 = vsel %vm1089_vm2, %v1309_v51, %v3415_v50  ;;  %2211 = vmatpush.bf16.msra.mxu0 %v2802_v36  ;;  %v3056_v14 = vld [vmem:[%s5027_s3 + $0x124] sm:$0xf]  ;;  %v2683_v39 = vld [vmem:[%s5027_s3 + $0x128] sm:$0xf0]  ;;  %v2897_v51 = vld [vmem:[%s5027_s3 + $0x2d0] sm:$0xf] }
 0x3be   :  { %3448 = vrot.lane.b32.xlu0 %v3447_v13, %s3476_s14  ;;  %v1090_v52 = vsel %vm1089_vm2, %v1088_v29, %v3416_v20  ;;  %2184 = vmatpush.bf16.msrb.mxu1 %v2682_v45  ;;  %v2666_v41 = vor.u32 %v3053_v15, %v2665_v7  ;;  %v2794_v16 = vor.u32 %v3085_v55, %v2793_v57  ;;  %v3431_v17 = vunpack.i.h.bf16 %v3429_v19  ;;  %v3032_v45 = vld [vmem:[%s5027_s3 + $0x64] sm:$0xf]  ;;  %v3054_v29 = vld [vmem:[%s5027_s3 + $0x114] sm:$0xf]  ;;  %v2737_v20 = vld [vmem:[%s5027_s3 + $0x190] sm:$0xf] }
 0x3bf   :  { %3453 = vrot.lane.b32.xlu1 %v3452_v43, %s3476_s14  ;;  %v3409_v53 = vpop.permute.xlu1 %3408  ;;  %2274 = vmatpush.bf16.msra.mxu2 %v2694_v3  ;;  %v2914_v58 = vor.u32 %v3115_v11, %v2913_v9  ;;  %v3430_v31 = vunpack.i.l.bf16 %v3429_v19  ;;  %v2906_v13 = vor.u32 %v3113_v28, %v2905_v38  ;;  %v2754_v33 = vor.u32 %v3075_v18, %v2753_v5  ;;  %v2881_v36 = vld [vmem:[%s5027_s3 + $0x2b0] sm:$0xf]  ;;  %v2729_v57 = vld [vmem:[%s5027_s3 + $0x180] sm:$0xf]  ;;  %v3069_v55 = vld [vmem:[%s5027_s3 + $0x184] sm:$0xf0] }
 0x3c0   :  { %v3411_v37 = vunpack.i.h.bf16 %v3409_v53  ;;  %v3410_v0 = vunpack.i.l.bf16 %v3409_v53  ;;  %v3404_v40 = vpop.permute.xlu0 %3403  ;;  %v2598_v49 = vor.u32 %v3034_v46, %v2595_v32  ;;  %v2686_v50 = vor.u32 %v3056_v14, %v2683_v39  ;;  %v3111_v53 = vld [vmem:[%s5027_s3 + $0x2d4] sm:$0xf0]  ;;  %v2571_v11 = vld [vmem:[%s5027_s3 + $0x48] sm:$0xf0]  ;;  %v3129_v19 = vld [vmem:[%s5027_s3 + $0x364] sm:$0xf0] }
 0x3c1   :  { %v3406_v56 = vunpack.i.h.bf16 %v3404_v40  ;;  %v3405_v54 = vunpack.i.l.bf16 %v3404_v40  ;;  %2212 = vmatpush.bf16.msra.mxu0 %v2794_v16  ;;  %2196 = vmatpush.bf16.msra.mxu3 %v2754_v33  ;;  %v3073_v40 = vld [vmem:[%s5027_s3 + $0x1a4] sm:$0xf0]  ;;  %v2890_v3 = vor.u32 %v3109_v60, %v2889_v25  ;;  %v2730_v9 = vor.u32 %v3069_v55, %v2729_v57  ;;  %v3026_v16 = vld [vmem:[%s5027_s3 + $0x34] sm:$0xf]  ;;  %v3127_v38 = vld [vmem:[%s5027_s3 + $0x354] sm:$0xf0] }
 0x3c2   :  { %2185 = vmatpush.bf16.msrb.mxu1 %v2674_v6  ;;  %v2953_v5 = vld [vmem:[%s5027_s3 + $0x340] sm:$0xf]  ;;  %v3125_v18 = vld [vmem:[%s5027_s3 + $0x344] sm:$0xf0]  ;;  %v3022_v39 = vld [vmem:[%s5027_s3 + $0x14] sm:$0xf] }
 0x3c3   :  { %v1094_v63 = vsel %vm1093_vm5, %v3406_v56, %v3411_v37  ;;  %v1311_v1 = vsel %vm1091_vm3, %v1310_v62, %v3405_v54  ;;  %v1312_v34 = vsel %vm1093_vm5, %v3405_v54, %v3410_v0  ;;  %v1092_v8 = vsel %vm1091_vm3, %v1090_v52, %v3406_v56  ;;  %2275 = vmatpush.bf16.msra.mxu2 %v2686_v50  ;;  %v2745_v0 = vld [vmem:[%s5027_s3 + $0x1a0] sm:$0xf]  ;;  %v2675_v56 = vld [vmem:[%s5027_s3 + $0x118] sm:$0xf0]  ;;  %v3071_v62 = vld [vmem:[%s5027_s3 + $0x194] sm:$0xf0] }
 0x3c4   :  { %v1456_v4 = vrot.slane %v1311_v1, 7  ;;  %v2898_v37 = vor.u32 %v3111_v53, %v2897_v51  ;;  %v2746_v10 = vor.u32 %v3073_v40, %v2745_v0  ;;  %v2590_v54 = vor.u32 %v3032_v45, %v2587_v2  ;;  %v3052_v52 = vld [vmem:[%s5027_s3 + $0x104] sm:$0xf]  ;;  %v2857_v33 = vld [vmem:[%s5027_s3 + $0x280] sm:$0xf] }
 0x3c5   :  { %v2678_v59 = vor.u32 %v3054_v29, %v2675_v56  ;;  %v2738_v1 = vor.u32 %v3071_v62, %v2737_v20  ;;  %v2954_v46 = vor.u32 %v3125_v18, %v2953_v5  ;;  %v3101_v32 = vld [vmem:[%s5027_s3 + $0x284] sm:$0xf0]  ;;  %v2945_v51 = vld [vmem:[%s5027_s3 + $0x330] sm:$0xf]  ;;  %v3123_v53 = vld [vmem:[%s5027_s3 + $0x334] sm:$0xf0] }
 0x3c6   :  { %v1470_v26 = vsel %vm701_vm4, %v1092_v8, %v1456_v4  ;;  %2186 = vmatpush.bf16.msrb.mxu1 %v2666_v41  ;;  %2197 = vmatpush.bf16.msra.mxu3 %v2746_v10  ;;  %v2667_v4 = vld [vmem:[%s5027_s3 + $0x108] sm:$0xf0]  ;;  %v3107_v8 = vld [vmem:[%s5027_s3 + $0x2b4] sm:$0xf0]  ;;  %v3105_v41 = vld [vmem:[%s5027_s3 + $0x2a4] sm:$0xf0]  ;;  %v2858_v14 = vor.u32 %v3101_v32, %v2857_v33 }
 0x3c7   :  { %v3424_v35 = vpop.permute.xlu1 %3423  ;;  %v4549_v21 = vpack.c.bf16 %v1470_v26, %v1470_v26  ;;  %2276 = vmatpush.bf16.msra.mxu2 %v2678_v59  ;;  %v2670_v7 = vor.u32 %v3052_v52, %v2667_v4  ;;  %v2882_v15 = vor.u32 %v3107_v8, %v2881_v36  ;;  %v3028_v26 = vld [vmem:[%s5027_s3 + $0x44] sm:$0xf]  ;;  %v2971_v40 = vld [vmem:[%s5027_s3 + $0x368] sm:$0xf0]  ;;  %v2937_v56 = vld [vmem:[%s5027_s3 + $0x320] sm:$0xf] }
 0x3c8   :  { %v3426_v27 = vunpack.i.h.bf16 %v3424_v35  ;;  %v3425_v47 = vunpack.i.l.bf16 %v3424_v35  ;;  %v3419_v61 = vpop.permute.xlu0 %3418  ;;  %v2969_v35 = vld [vmem:[%s5027_s3 + $0x360] sm:$0xf]  ;;  %v3128_v0 = vld [vmem:[%s5027_s3 + $0x364] sm:$0xf]  ;;  %v2539_v2 = vld [vmem:[%s5027_s3 + $0x8] sm:$0xf0] }
 0x3c9   :  { %v3421_v24 = vunpack.i.h.bf16 %v3419_v61  ;;  %v3420_v22 = vunpack.i.l.bf16 %v3419_v61  ;;  %2174 = vmatmul.bf16.vlgmr.msrb.gmra.mxu0 %v4549_v21  ;;  %v2873_v61 = vld [vmem:[%s5027_s3 + $0x2a0] sm:$0xf]  ;;  %v2974_v45 = vor.u32 %v3128_v0, %v2971_v40  ;;  %v3020_v10 = vld [vmem:[%s5027_s3 + $0x4] sm:$0xf]  ;;  %v3126_v25 = vld [vmem:[%s5027_s3 + $0x354] sm:$0xf] }
 0x3ca   :  { %2218 = vmatpush.bf16.msra.mxu1 %v2914_v58  ;;  %2244 = vmatpush.bf16.msrb.mxu0 %v2598_v49  ;;  %v2961_v58 = vld [vmem:[%s5027_s3 + $0x350] sm:$0xf]  ;;  %v2547_v49 = vld [vmem:[%s5027_s3 + $0x18] sm:$0xf0]  ;;  %v2542_v29 = vor.u32 %v3020_v10, %v2539_v2  ;;  %v3119_v62 = vld [vmem:[%s5027_s3 + $0x314] sm:$0xf0] }
 0x3cb   :  { %v1096_v30 = vsel %vm1095_vm6, %v1094_v63, %v3421_v24  ;;  %v1313_v23 = vsel %vm1095_vm6, %v1312_v34, %v3420_v22  ;;  %v3030_v63 = vld [vmem:[%s5027_s3 + $0x54] sm:$0xf]  ;;  %v2579_v34 = vld [vmem:[%s5027_s3 + $0x58] sm:$0xf0]  ;;  %2198 = vmatpush.bf16.msra.mxu3 %v2738_v1  ;;  %2277 = vmatpush.bf16.msra.mxu2 %v2670_v7  ;;  %v2874_v24 = vor.u32 %v3105_v41, %v2873_v61  ;;  %v2929_v20 = vld [vmem:[%s5027_s3 + $0x310] sm:$0xf] }
 0x3cc   :  { %v1098_v42 = vsel %vm1097_vm10, %v1096_v30, %v3426_v27  ;;  %v1314_v12 = vsel %vm1097_vm10, %v1313_v23, %v3425_v47  ;;  %v2582_v6 = vor.u32 %v3030_v63, %v2579_v34  ;;  %v2574_v27 = vor.u32 %v3028_v26, %v2571_v11  ;;  %v2563_v22 = vld [vmem:[%s5027_s3 + $0x38] sm:$0xf0]  ;;  %v3103_v30 = vld [vmem:[%s5027_s3 + $0x294] sm:$0xf0]  ;;  %v3124_v1 = vld [vmem:[%s5027_s3 + $0x344] sm:$0xf] }
 0x3cd   :  { %v4563_v43 = vsel %vm1099_vm0, %v1098_v42, %v3431_v17  ;;  %v4566_v44 = vsel %vm1099_vm0, %v1314_v12, %v3430_v31  ;;  %v2970_v47 = vor.u32 %v3129_v19, %v2969_v35  ;;  %v2566_v28 = vor.u32 %v3026_v16, %v2563_v22  ;;  %v2865_v31 = vld [vmem:[%s5027_s3 + $0x290] sm:$0xf]  ;;  %v3024_v42 = vld [vmem:[%s5027_s3 + $0x24] sm:$0xf]  ;;  %v2555_v12 = vld [vmem:[%s5027_s3 + $0x28] sm:$0xf0] }
 0x3ce   :  { %2219 = vmatpush.bf16.msra.mxu1 %v2906_v13  ;;  %2245 = vmatpush.bf16.msrb.mxu0 %v2590_v54  ;;  %v2962_v17 = vor.u32 %v3127_v38, %v2961_v58  ;;  %v2866_v23 = vor.u32 %v3103_v30, %v2865_v31  ;;  %v2558_v13 = vor.u32 %v3024_v42, %v2555_v12  ;;  %v3121_v54 = vld [vmem:[%s5027_s3 + $0x324] sm:$0xf0]  ;;  %v2963_v60 = vld [vmem:[%s5027_s3 + $0x358] sm:$0xf0]  ;;  %v2955_v34 = vld [vmem:[%s5027_s3 + $0x348] sm:$0xf0] }
 0x3cf   :  { %2199 = vmatpush.bf16.msra.mxu3 %v2730_v9  ;;  %v2550_v50 = vor.u32 %v3022_v39, %v2547_v49  ;;  %2323 = vmatpush.bf16.msrb.mxu2 %v2974_v45  ;;  %v2938_v59 = vor.u32 %v3121_v54, %v2937_v56  ;;  %v2930_v63 = vor.u32 %v3119_v62, %v2929_v20  ;;  %v3117_v7 = vld [vmem:[%s5027_s3 + $0x304] sm:$0xf0]  ;;  %vm1222_vm0 = vcmask 785408   ;;  %v3122_v55 = vld [vmem:[%s5027_s3 + $0x334] sm:$0xf] }
 0x3d0   :  { %v2958_v4 = vor.u32 %v3124_v1, %v2955_v34  ;;  %v2947_v26 = vld [vmem:[%s5027_s3 + $0x338] sm:$0xf0]  ;;  %v3050_v11 = vld [vmem:[%s5027_s3 + $0xf4] sm:$0xf]  ;;  %v3120_v61 = vld [vmem:[%s5027_s3 + $0x324] sm:$0xf] }
 0x3d1   :  { %v2659_v35 = vld [vmem:[%s5027_s3 + $0xf8] sm:$0xf0]  ;;  %v2950_v19 = vor.u32 %v3122_v55, %v2947_v26  ;;  %v3048_v58 = vld [vmem:[%s5027_s3 + $0xe4] sm:$0xf]  ;;  %v3046_v30 = vld [vmem:[%s5027_s3 + $0xd4] sm:$0xf] }
 0x3d2   :  { %2220 = vmatpush.bf16.msra.mxu1 %v2898_v37  ;;  %2246 = vmatpush.bf16.msrb.mxu0 %v2582_v6  ;;  %v2946_v37 = vor.u32 %v3123_v53, %v2945_v51  ;;  %v2921_v6 = vld [vmem:[%s5027_s3 + $0x300] sm:$0xf]  ;;  %v2662_v16 = vor.u32 %v3050_v11, %v2659_v35  ;;  %v2931_v31 = vld [vmem:[%s5027_s3 + $0x318] sm:$0xf0]  ;;  %v3116_v12 = vld [vmem:[%s5027_s3 + $0x304] sm:$0xf] }
 0x3d3   :  { %2232 = vmatpush.bf16.msrb.mxu3 %v2970_v47  ;;  %v2922_v8 = vor.u32 %v3117_v7, %v2921_v6  ;;  %v2923_v18 = vld [vmem:[%s5027_s3 + $0x308] sm:$0xf0]  ;;  %v3098_v51 = vld [vmem:[%s5027_s3 + $0x274] sm:$0xf]  ;;  %v2851_v45 = vld [vmem:[%s5027_s3 + $0x278] sm:$0xf0] }
 0x3d4   :  { %v2635_v33 = vld [vmem:[%s5027_s3 + $0xc8] sm:$0xf0]  ;;  %v2926_v32 = vor.u32 %v3116_v12, %v2923_v18  ;;  %v3082_v10 = vld [vmem:[%s5027_s3 + $0x1f4] sm:$0xf]  ;;  %v2787_v2 = vld [vmem:[%s5027_s3 + $0x1f8] sm:$0xf0]  ;;  %v2854_v62 = vor.u32 %v3098_v51, %v2851_v45 }
 0x3d5   :  { %v3042_v54 = vld [vmem:[%s5027_s3 + $0xb4] sm:$0xf]  ;;  %v2790_v1 = vor.u32 %v3082_v10, %v2787_v2  ;;  %v2843_v6 = vld [vmem:[%s5027_s3 + $0x268] sm:$0xf0]  ;;  %v2835_v11 = vld [vmem:[%s5027_s3 + $0x258] sm:$0xf0] }
 0x3d6   :  { %2221 = vmatpush.bf16.msra.mxu1 %v2890_v3  ;;  %2247 = vmatpush.bf16.msrb.mxu0 %v2574_v27  ;;  %v2966_v3 = vor.u32 %v3126_v25, %v2963_v60  ;;  %v3094_v26 = vld [vmem:[%s5027_s3 + $0x254] sm:$0xf]  ;;  %v3088_v18 = vld [vmem:[%s5027_s3 + $0x224] sm:$0xf]  ;;  %vm2341_vm13 = vcmask 420866  }
 0x3d7   :  { %2233 = vmatpush.bf16.msrb.mxu3 %v2962_v17  ;;  %v3074_v12 = vld [vmem:[%s5027_s3 + $0x1b4] sm:$0xf] }
 0x3d8   :  { %2324 = vmatpush.bf16.msrb.mxu2 %v2966_v3 }
 0x3da   :  { %2222 = vmatpush.bf16.msra.mxu1 %v2882_v15  ;;  %2248 = vmatpush.bf16.msrb.mxu0 %v2566_v28  ;;  %v3118_v28 = vld [vmem:[%s5027_s3 + $0x314] sm:$0xf] }
 0x3db   :  { %2234 = vmatpush.bf16.msrb.mxu3 %v2954_v46  ;;  %v2934_v42 = vor.u32 %v3118_v28, %v2931_v31  ;;  %v3044_v46 = vld [vmem:[%s5027_s3 + $0xc4] sm:$0xf]  ;;  %v2603_v28 = vld [vmem:[%s5027_s3 + $0x88] sm:$0xf0]  ;;  %v3090_v31 = vld [vmem:[%s5027_s3 + $0x234] sm:$0xf] }
 0x3dc   :  { %2325 = vmatpush.bf16.msrb.mxu2 %v2958_v4  ;;  %v2638_v53 = vor.u32 %v3044_v46, %v2635_v33  ;;  %v2811_v33 = vld [vmem:[%s5027_s3 + $0x228] sm:$0xf0] }
 0x3de   :  { %2223 = vmatpush.bf16.msra.mxu1 %v2874_v24  ;;  %2249 = vmatpush.bf16.msrb.mxu0 %v2558_v13  ;;  %v2939_v24 = vld [vmem:[%s5027_s3 + $0x328] sm:$0xf0] }
 0x3df   :  { %2235 = vmatpush.bf16.msrb.mxu3 %v2946_v37  ;;  %v2942_v38 = vor.u32 %v3120_v61, %v2939_v24  ;;  %v2611_v61 = vld [vmem:[%s5027_s3 + $0x98] sm:$0xf0]  ;;  %v2827_v24 = vld [vmem:[%s5027_s3 + $0x248] sm:$0xf0] }
 0x3e0   :  { %2326 = vmatpush.bf16.msrb.mxu2 %v2950_v19  ;;  %v3078_v19 = vld [vmem:[%s5027_s3 + $0x1d4] sm:$0xf] }
 0x3e2   :  { %2224 = vmatpush.bf16.msra.mxu1 %v2866_v23  ;;  %2250 = vmatpush.bf16.msrb.mxu0 %v2550_v50  ;;  %v2643_v23 = vld [vmem:[%s5027_s3 + $0xd8] sm:$0xf0] }
 0x3e3   :  { %2236 = vmatpush.bf16.msrb.mxu3 %v2938_v59  ;;  %v2646_v5 = vor.u32 %v3046_v30, %v2643_v23  ;;  %v2627_v59 = vld [vmem:[%s5027_s3 + $0xb8] sm:$0xf0] }
 0x3e4   :  { %2327 = vmatpush.bf16.msrb.mxu2 %v2942_v38  ;;  %v2630_v7 = vor.u32 %v3042_v54, %v2627_v59  ;;  %v3036_v38 = vld [vmem:[%s5027_s3 + $0x84] sm:$0xf]  ;;  %v2819_v23 = vld [vmem:[%s5027_s3 + $0x238] sm:$0xf0]  ;;  %v3114_v59 = vld [vmem:[%s5027_s3 + $0x2f4] sm:$0xf] }
 0x3e5   :  { %v2822_v46 = vor.u32 %v3090_v31, %v2819_v23  ;;  %v2875_v23 = vld [vmem:[%s5027_s3 + $0x2a8] sm:$0xf0] }
 0x3e6   :  { %2225 = vmatpush.bf16.msra.mxu1 %v2858_v14  ;;  %2251 = vmatpush.bf16.msrb.mxu0 %v2542_v29 }
 0x3e7   :  { %2237 = vmatpush.bf16.msrb.mxu3 %v2930_v63  ;;  %v3096_v63 = vld [vmem:[%s5027_s3 + $0x264] sm:$0xf] }
 0x3e8   :  { %2328 = vmatpush.bf16.msrb.mxu2 %v2934_v42  ;;  %v2846_v55 = vor.u32 %v3096_v63, %v2843_v6  ;;  %v2606_v42 = vor.u32 %v3036_v38, %v2603_v28  ;;  %v2883_v38 = vld [vmem:[%s5027_s3 + $0x2b8] sm:$0xf0] }
 0x3eb   :  { %2238 = vmatpush.bf16.msrb.mxu3 %v2922_v8  ;;  %v2779_v8 = vld [vmem:[%s5027_s3 + $0x1e8] sm:$0xf0] }
 0x3ec   :  { %2329 = vmatpush.bf16.msrb.mxu2 %v2926_v32 }
 0x405   :  { %v4748_v52 = vpop.f32.mrf.mxu3 }
 0x408   :  { %v4756_v36 = vpop.permute.xlu0 %3433  ;;  %v4804_v13 = vpop.permute.xlu2 %3443 }
 0x409   :  { %v3436_v15 = vunpack.i.h.bf16 %v4756_v36  ;;  %v3435_v57 = vunpack.i.l.bf16 %v4756_v36  ;;  %v3445_v39 = vunpack.i.l.bf16 %v4804_v13  ;;  %v3446_v37 = vunpack.i.h.bf16 %v4804_v13  ;;  %v3080_v36 = vld [vmem:[%s5027_s3 + $0x1e4] sm:$0xf]  ;;  %v2795_v13 = vld [vmem:[%s5027_s3 + $0x208] sm:$0xf0] }
 0x40b   :  { %v1449_v9 = vsel %vm1222_vm0, %v4566_v44, %v3435_v57  ;;  %v1238_v47 = vsel %vm1222_vm0, %v4563_v43, %v3436_v15  ;;  %v2651_v43 = vld [vmem:[%s5027_s3 + $0xe8] sm:$0xf0] }
 0x40c   :  { %v1457_v27 = vrot.slane %v1449_v9, 7  ;;  %v2654_v17 = vor.u32 %v3048_v58, %v2651_v43  ;;  %v2782_v9 = vor.u32 %v3080_v36, %v2779_v8  ;;  %v3076_v58 = vld [vmem:[%s5027_s3 + $0x1c4] sm:$0xf]  ;;  %v2763_v43 = vld [vmem:[%s5027_s3 + $0x1c8] sm:$0xf0] }
 0x40d   :  { %v2164_v44 = vpop.f32.mrf.mxu3  ;;  %v2766_v30 = vor.u32 %v3076_v58, %v2763_v43  ;;  %v3084_v8 = vld [vmem:[%s5027_s3 + $0x204] sm:$0xf]  ;;  %v3106_v43 = vld [vmem:[%s5027_s3 + $0x2b4] sm:$0xf] }
 0x40e   :  { %v1471_v41 = vsel %vm701_vm4, %v1238_v47, %v1457_v27  ;;  %v2771_v27 = vld [vmem:[%s5027_s3 + $0x1d8] sm:$0xf0]  ;;  %v3038_v47 = vld [vmem:[%s5027_s3 + $0x94] sm:$0xf]  ;;  %v2838_v44 = vor.u32 %v3094_v26, %v2835_v11  ;;  %v2731_v11 = vld [vmem:[%s5027_s3 + $0x188] sm:$0xf0] }
 0x40f   :  { %v1478_v22 = vpack.c.bf16 %v1471_v41, %v1471_v41  ;;  %v3092_v41 = vld [vmem:[%s5027_s3 + $0x244] sm:$0xf] }
 0x411   :  { %2187 = vmatmul.bf16.vlgmr.msrb.gmra.mxu1 %v1478_v22  ;;  %2278 = vmatmul.bf16.vlgmr.msra.gmra.mxu2 %v1478_v22  ;;  %v2614_v22 = vor.u32 %v3038_v47, %v2611_v61  ;;  %v2899_v47 = vld [vmem:[%s5027_s3 + $0x2d8] sm:$0xf0] }
 0x412   :  { %2257 = vmatpush.bf16.msrb.mxu1 %v2662_v16  ;;  %v2774_v16 = vor.u32 %v3078_v19, %v2771_v27  ;;  %v3110_v27 = vld [vmem:[%s5027_s3 + $0x2d4] sm:$0xf] }
 0x416   :  { %2258 = vmatpush.bf16.msrb.mxu1 %v2654_v17  ;;  %v2830_v17 = vor.u32 %v3092_v41, %v2827_v24  ;;  %v2902_v41 = vor.u32 %v3110_v27, %v2899_v47  ;;  %v2891_v24 = vld [vmem:[%s5027_s3 + $0x2c8] sm:$0xf0] }
 0x418   :  { %v3439_v14 = vpop.permute.xlu1 %3438 }
 0x419   :  { %v3441_v49 = vunpack.i.h.bf16 %v3439_v14  ;;  %v3440_v50 = vunpack.i.l.bf16 %v3439_v14  ;;  %v3072_v14 = vld [vmem:[%s5027_s3 + $0x1a4] sm:$0xf] }
 0x41a   :  { %2259 = vmatpush.bf16.msrb.mxu1 %v2646_v5  ;;  %v2755_v5 = vld [vmem:[%s5027_s3 + $0x1b8] sm:$0xf0] }
 0x41b   :  { %v1437_v0 = vsel %vm1222_vm0, %v3435_v57, %v3440_v50  ;;  %v1438_v40 = vsel %vm1222_vm0, %v3440_v50, %v3445_v39  ;;  %v1224_v25 = vsel %vm1222_vm0, %v3441_v49, %v3446_v37  ;;  %v1223_v60 = vsel %vm1222_vm0, %v3436_v15, %v3441_v49  ;;  %v3040_v15 = vld [vmem:[%s5027_s3 + $0xa4] sm:$0xf]  ;;  %v2619_v57 = vld [vmem:[%s5027_s3 + $0xa8] sm:$0xf0] }
 0x41c   :  { %v1458_v29 = vrot.slane %v1437_v0, 7  ;;  %v1459_v56 = vrot.slane %v1438_v40, 7  ;;  %v2622_v35 = vor.u32 %v3040_v15, %v2619_v57  ;;  %v2758_v32 = vor.u32 %v3074_v12, %v2755_v5  ;;  %v2747_v49 = vld [vmem:[%s5027_s3 + $0x1a8] sm:$0xf0]  ;;  %v2867_v12 = vld [vmem:[%s5027_s3 + $0x298] sm:$0xf0] }
 0x41d   :  { %v2750_v0 = vor.u32 %v3072_v14, %v2747_v49 }
 0x41e   :  { %v1472_v3 = vsel %vm701_vm4, %v1223_v60, %v1458_v29  ;;  %v1473_v20 = vsel %vm701_vm4, %v1224_v25, %v1459_v56  ;;  %2260 = vmatpush.bf16.msrb.mxu1 %v2638_v53  ;;  %v2814_v53 = vor.u32 %v3088_v18, %v2811_v33  ;;  %v3086_v29 = vld [vmem:[%s5027_s3 + $0x214] sm:$0xf]  ;;  %v2803_v56 = vld [vmem:[%s5027_s3 + $0x218] sm:$0xf0] }
 0x41f   :  { %v4848_v34 = vpack.c.bf16 %v1472_v3, %v1472_v3  ;;  %v4850_v4 = vpack.c.bf16 %v1473_v20, %v1473_v20  ;;  %v2915_v25 = vld [vmem:[%s5027_s3 + $0x2f8] sm:$0xf0]  ;;  %v3070_v20 = vld [vmem:[%s5027_s3 + $0x194] sm:$0xf] }
 0x420   :  { %v2918_v36 = vor.u32 %v3114_v59, %v2915_v25 }
 0x421   :  { %2200 = vmatmul.bf16.vlgmr.msra.gmra.mxu3 %v4848_v34  ;;  %2213 = vmatmul.bf16.vlgmr.msra.gmra.mxu0 %v4850_v4 }
 0x422   :  { %2296 = vmatpush.bf16.msra.mxu0 %v2854_v62  ;;  %2283 = vmatpush.bf16.msra.mxu3 %v2790_v1  ;;  %v2806_v1 = vor.u32 %v3086_v29, %v2803_v56 }
 0x423   :  { %2261 = vmatpush.bf16.msrb.mxu1 %v2630_v7 }
 0x426   :  { %2297 = vmatpush.bf16.msra.mxu0 %v2846_v55  ;;  %2284 = vmatpush.bf16.msra.mxu3 %v2782_v9  ;;  %v2907_v55 = vld [vmem:[%s5027_s3 + $0x2e8] sm:$0xf0]  ;;  %v3068_v9 = vld [vmem:[%s5027_s3 + $0x184] sm:$0xf] }
 0x427   :  { %2262 = vmatpush.bf16.msrb.mxu1 %v2622_v35  ;;  %v2798_v35 = vor.u32 %v3084_v8, %v2795_v13  ;;  %v2734_v61 = vor.u32 %v3068_v9, %v2731_v11 }
 0x42a   :  { %2298 = vmatpush.bf16.msra.mxu0 %v2838_v44  ;;  %2285 = vmatpush.bf16.msra.mxu3 %v2774_v16  ;;  %v1593_v44 = vld [vmem:[%s5028_s4] sm:$0x3]  ;;  %v3108_v16 = vld [vmem:[%s5027_s3 + $0x2c4] sm:$0xf] }
 0x42b   :  { %2263 = vmatpush.bf16.msrb.mxu1 %v2614_v22  ;;  %v1595_v22 = vperm.slane %v1593_v44, 0  ;;  %v2894_v58 = vor.u32 %v3108_v16, %v2891_v24  ;;  %v1596_v25 = vperm.slane %v1593_v44, 1 }
 0x42d   :  { %v2163_v28 = vadd.f32 %v4748_v52, %v1595_v22  ;;  %v3102_v52 = vld [vmem:[%s5027_s3 + $0x294] sm:$0xf] }
 0x42e   :  { %2299 = vmatpush.bf16.msra.mxu0 %v2830_v17  ;;  %2286 = vmatpush.bf16.msra.mxu3 %v2766_v30  ;;  %v2886_v30 = vor.u32 %v3106_v43, %v2883_v38  ;;  %v2870_v18 = vor.u32 %v3102_v52, %v2867_v12 }
 0x42f   :  { %2264 = vmatpush.bf16.msrb.mxu1 %v2606_v42 }
 0x430   :  { %v3449_v50 = vpop.permute.xlu0 %3448 }
 0x431   :  { %v3454_v51 = vpop.permute.xlu1 %3453  ;;  %2252 = vmatmul.bf16.vlgmr.msrb.gmra.mxu0 %v4228_v48  ;;  %v3451_v40 = vunpack.i.h.bf16 %v3449_v50  ;;  %v3450_v45 = vunpack.i.l.bf16 %v3449_v50 }
 0x432   :  { %v3456_v10 = vunpack.i.h.bf16 %v3454_v51  ;;  %v3455_v2 = vunpack.i.l.bf16 %v3454_v51  ;;  %2300 = vmatpush.bf16.msra.mxu0 %v2822_v46  ;;  %2287 = vmatpush.bf16.msra.mxu3 %v2758_v32  ;;  %v3100_v46 = vld [vmem:[%s5027_s3 + $0x284] sm:$0xf] }
 0x433   :  { %v1450_v48 = vsel %vm5031_vm7, %v3445_v39, %v3450_v45  ;;  %v2739_v39 = vld [vmem:[%s5027_s3 + $0x198] sm:$0xf0]  ;;  %v1239_v62 = vsel %vm5033_vm9, %v3446_v37, %v3451_v40  ;;  %v3112_v37 = vld [vmem:[%s5027_s3 + $0x2e4] sm:$0xf] }
 0x434   :  { %v1447_v54 = vsel %vm5032_vm8, %v3450_v45, %v3455_v2  ;;  %v1460_v60 = vrot.slane %v1450_v48, 7  ;;  %v1235_v63 = vsel %vm5034_vm11, %v3451_v40, %v3456_v10  ;;  %v2742_v26 = vor.u32 %v3070_v20, %v2739_v39 }
 0x435   :  { %v1461_v3 = vrot.slane %v1447_v54, 7  ;;  %v2910_v19 = vor.u32 %v3112_v37, %v2907_v55 }
 0x436   :  { %2301 = vmatpush.bf16.msra.mxu0 %v2814_v53  ;;  %2288 = vmatpush.bf16.msra.mxu3 %v2750_v0  ;;  %v1474_v6 = vsel %vm701_vm4, %v1239_v62, %v1460_v60 }
 0x437   :  { %v1475_v7 = vsel %vm701_vm4, %v1235_v63, %v1461_v3  ;;  %v1481_v57 = vpack.c.bf16 %v1474_v6, %v1474_v6  ;;  %vm2338_vm4 = vcmask 1041408  }
 0x438   :  { %v1482_v15 = vpack.c.bf16 %v1475_v7, %v1475_v7  ;;  %vm2342_vm14 = vmor %vm2341_vm13, %vm2338_vm4 }
 0x439   :  { %2226 = vmatmul.bf16.vlgmr.msra.gmra.mxu1 %v1481_v57 }
 0x43a   :  { %2975 = vmatmul.msk.bf16.vlgmr.msrb.gmra.mxu3 %vm2149_vm12, %v1482_v15  ;;  %2302 = vmatpush.bf16.msra.mxu0 %v2806_v1 }
 0x43b   :  { %2309 = vmatpush.bf16.msra.mxu1 %v2918_v36  ;;  %2976 = vmatmul.msk.bf16.vlgmr.msrb.gmra.mxu2 %vm2149_vm12, %v1482_v15 }
 0x43c   :  { %2289 = vmatpush.bf16.msra.mxu3 %v2742_v26 }
 0x43e   :  { %2303 = vmatpush.bf16.msra.mxu0 %v2798_v35 }
 0x43f   :  { %2310 = vmatpush.bf16.msra.mxu1 %v2910_v19 }
 0x440   :  { %2290 = vmatpush.bf16.msra.mxu3 %v2734_v61 }
 0x441   :  { %2304 = vmatmul.bf16.vlgmr.msra.gmra.mxu0 %v4850_v4  ;;  %v3104_v4 = vld [vmem:[%s5027_s3 + $0x2a4] sm:$0xf] }
 0x442   :  { %v2878_v42 = vor.u32 %v3104_v4, %v2875_v23 }
 0x443   :  { %2311 = vmatpush.bf16.msra.mxu1 %v2902_v41 }
 0x446   :  { %v2175_v17 = vpop.f32.mrf.mxu0 }
 0x447   :  { %v2176_v31 = vadd.f32 %v2175_v17, %v2163_v28  ;;  %2312 = vmatpush.bf16.msra.mxu1 %v2894_v58 }
 0x449   :  { %2265 = vmatmul.bf16.vlgmr.msrb.gmra.mxu1 %v4549_v21  ;;  %v2859_v21 = vld [vmem:[%s5027_s3 + $0x288] sm:$0xf0] }
 0x44a   :  { %2291 = vmatmul.bf16.vlgmr.msra.gmra.mxu3 %v4848_v34  ;;  %v2862_v34 = vor.u32 %v3100_v46, %v2859_v21 }
 0x44b   :  { %2313 = vmatpush.bf16.msra.mxu1 %v2886_v30 }
 0x44e   :  { %v2177_v5 = vpop.f32.mrf.mxu0 }
 0x44f   :  { %2314 = vmatpush.bf16.msra.mxu1 %v2878_v42 }
 0x453   :  { %2315 = vmatpush.bf16.msra.mxu1 %v2870_v18 }
 0x457   :  { %2316 = vmatpush.bf16.msra.mxu1 %v2862_v34 }
 0x45a   :  { %2317 = vmatmul.bf16.vlgmr.msra.gmra.mxu1 %v1481_v57 }
 0x48e   :  { %v2188_v33 = vpop.f32.mrf.mxu1 }
 0x48f   :  { %v2189_v32 = vadd.f32 %v2188_v33, %v2176_v31 }
 0x494   :  { %v2279_v14 = vpop.f32.mrf.mxu2 }
 0x496   :  { %v2190_v49 = vpop.f32.mrf.mxu1 }
 0x49c   :  { %v2281_v50 = vpop.f32.mrf.mxu2 }
 0x49e   :  { %v2214_v51 = vpop.f32.mrf.mxu0 }
 0x4a4   :  { %v2201_v53 = vpop.f32.mrf.mxu3 }
 0x4a5   :  { %v2202_v36 = vadd.f32 %v2201_v53, %v2189_v32 }
 0x4a6   :  { %v2216_v0 = vpop.f32.mrf.mxu0 }
 0x4a7   :  { %v2215_v13 = vadd.f32 %v2214_v51, %v2202_v36 }
 0x4ac   :  { %v2203_v40 = vpop.f32.mrf.mxu3 }
 0x4ae   :  { %v2253_v45 = vpop.f32.mrf.mxu0 }
 0x4af   :  { %v2254_v39 = vadd.f32 %v2253_v45, %v1596_v25 }
 0x4b6   :  { %v2255_v10 = vpop.f32.mrf.mxu0  ;;  %v2227_v2 = vpop.f32.mrf.mxu1 }
 0x4b7   :  { %v2228_v55 = vadd.f32 %v2227_v2, %v2215_v13 }
 0x4bd   :  { %v2240_v29 = vpop.f32.mrf.mxu3 }
 0x4be   :  { %v2331_v56 = vpop.f32.mrf.mxu2  ;;  %v2229_v48 = vpop.f32.mrf.mxu1  ;;  %v2241_v9 = vadd.f32 %v2240_v29, %v2228_v55 }
 0x4bf   :  { %v2305_v54 = vpop.f32.mrf.mxu0 }
 0x4c5   :  { %v2242_v59 = vpop.f32.mrf.mxu3 }
 0x4c6   :  { %v2333_v60 = vpop.f32.mrf.mxu2  ;;  %v2266_v3 = vpop.f32.mrf.mxu1 }
 0x4c7   :  { %v2307_v20 = vpop.f32.mrf.mxu0  ;;  %v2267_v62 = vadd.f32 %v2266_v3, %v2254_v39 }
 0x4c9   :  { %v2280_v6 = vadd.f32 %v2279_v14, %v2267_v62 }
 0x4cd   :  { %v2292_v63 = vpop.f32.mrf.mxu3 }
 0x4ce   :  { %v2268_v1 = vpop.f32.mrf.mxu1  ;;  %v2293_v7 = vadd.f32 %v2292_v63, %v2280_v6 }
 0x4d0   :  { %v2306_v15 = vadd.f32 %v2305_v54, %v2293_v7 }
 0x4d5   :  { %v2294_v8 = vpop.f32.mrf.mxu3 }
 0x4d7   :  { %v2318_v57 = vpop.f32.mrf.mxu1 }
 0x4d8   :  { %v2319_v37 = vadd.f32 %v2318_v57, %v2306_v15 }
 0x4da   :  { %v2332_v26 = vadd.f32 %v2331_v56, %v2319_v37 }
 0x4dc   :  { %v2337_v11 = vrot.slane %v2332_v26, 6 }
 0x4de   :  { %v2339_v35 = vsel %vm2338_vm4, %v2241_v9, %v2337_v11 }
 0x4df   :  { %2343 = vst.msk [vmem:[%s5029_s5] sm:$0xf] %vm2342_vm14, %v2339_v35  ;;  %v2320_v19 = vpop.f32.mrf.mxu1 }

</bundles_post_ra>
